<compile_context>
chip_gen: v6e
topology: v6e:2x2x1
jax: 0.10.0
libtpu: 0.0.40
codegen_flags: <defaults>
</compile_context>

<pallas_src>
import functools
import math

import jax
import jax.numpy as jnp
from jax.experimental import pallas as pl
from jax.experimental.pallas import tpu as pltpu

BN_EPS = 1e-5


def _round_up(n, m):
    return (n + m - 1) // m * m


def _pick_batch_tile(batch, target):
    """Largest batch tile <= target that divides batch and is sublane(8)-aligned."""
    target = max(8, min(target, batch))
    if batch <= target:
        return batch
    for bt in range(target, 7, -1):
        if batch % bt == 0 and bt % 8 == 0:
            return bt
    return batch  # fall back to a single full-batch tile (always a legal block)


def _vmem_limit_bytes(resident_bytes):
    # Raise the scoped-VMEM limit above the per-chip defaults (16 MiB v5e,
    # 32 MiB v6e/v7x).  TODO(synk): cap at ~56 MiB on v7x (64 MiB physical).
    return int(min(max(2 * resident_bytes, 32 << 20), 96 << 20))


# ----------------------------------------------------------------------------
# Fused single-block kernel (small, VMEM-resident shapes).
# ----------------------------------------------------------------------------
def _fused_kernel(x_ref, w1_ref, w2_ref, w3_ref, bn_ref, b3_ref, out_ref, *, batch):
    """Whole-problem ProjHead forward in one VMEM-resident block."""
    inv_b = 1.0 / float(batch)
    bn = bn_ref[...]  # (4, mlp) f32: rows = [gamma1, beta1, gamma2, beta2]

    def bn_relu(h, gamma, beta):
        # Training-mode BatchNorm1d (batch mean, biased variance), one pass, f32.
        s = jnp.sum(h, axis=0, keepdims=True)
        sq = jnp.sum(h * h, axis=0, keepdims=True)
        mean = s * inv_b
        var = jnp.maximum(sq * inv_b - mean * mean, 0.0)   # guard cancellation
        scale = gamma * jax.lax.rsqrt(var + BN_EPS)        # (1, mlp)
        shift = beta - mean * scale                        # (1, mlp)
        return jnp.maximum(h * scale + shift, 0.0)

    xb = x_ref[...].astype(jnp.bfloat16)  # cast in-register, not in the wrapper
    h1 = jnp.dot(xb, w1_ref[...], preferred_element_type=jnp.float32)
    y1 = bn_relu(h1, bn[0:1, :], bn[1:2, :])
    h2 = jnp.dot(y1.astype(jnp.bfloat16), w2_ref[...],
                 preferred_element_type=jnp.float32)
    y2 = bn_relu(h2, bn[2:3, :], bn[3:4, :])
    out = jnp.dot(y2.astype(jnp.bfloat16), w3_ref[...],
                  preferred_element_type=jnp.float32) + b3_ref[...]
    out_ref[...] = out.astype(out_ref.dtype)


# ----------------------------------------------------------------------------
# Batch-tiled two-pass-BN kernels.
# ----------------------------------------------------------------------------
def _lin_stats_kernel(x_ref, w_ref, h_ref, stats_ref):
    """h = bf16(x) @ w (f32 acc); accumulate per-feature [sum; sumsq]."""
    @pl.when(pl.program_id(0) == 0)
    def _():
        stats_ref[...] = jnp.zeros_like(stats_ref)

    h = jnp.dot(x_ref[...].astype(jnp.bfloat16), w_ref[...],
                preferred_element_type=jnp.float32)
    s = jnp.sum(h, axis=0, keepdims=True)
    sq = jnp.sum(h * h, axis=0, keepdims=True)
    stats_ref[...] += jnp.concatenate([s, sq], axis=0)
    h_ref[...] = h.astype(h_ref.dtype)


def _bn_lin_stats_kernel(h_in_ref, stats_in_ref, bn_ref, w_ref,
                         h_out_ref, stats_out_ref, *, batch, bn_row):
    """Fold BN stats -> scale/shift, apply + ReLU, next matmul, next stats."""
    @pl.when(pl.program_id(0) == 0)
    def _():
        stats_out_ref[...] = jnp.zeros_like(stats_out_ref)

    inv_b = 1.0 / float(batch)
    st = stats_in_ref[...]   # (2, mlp) f32
    bn = bn_ref[...]         # (4, mlp) f32
    mean = st[0:1, :] * inv_b
    var = jnp.maximum(st[1:2, :] * inv_b - mean * mean, 0.0)
    scale = bn[bn_row:bn_row + 1, :] * jax.lax.rsqrt(var + BN_EPS)
    shift = bn[bn_row + 1:bn_row + 2, :] - mean * scale
    y = jnp.maximum(h_in_ref[...].astype(jnp.float32) * scale + shift, 0.0)

    h = jnp.dot(y.astype(jnp.bfloat16), w_ref[...],
                preferred_element_type=jnp.float32)
    s = jnp.sum(h, axis=0, keepdims=True)
    sq = jnp.sum(h * h, axis=0, keepdims=True)
    stats_out_ref[...] += jnp.concatenate([s, sq], axis=0)
    h_out_ref[...] = h.astype(h_out_ref.dtype)


def _bn_lin_bias_kernel(h_in_ref, stats_in_ref, bn_ref, w_ref, b_ref, out_ref,
                        *, batch, bn_row):
    """Fold BN stats -> scale/shift, apply + ReLU, final matmul + bias."""
    inv_b = 1.0 / float(batch)
    st = stats_in_ref[...]
    bn = bn_ref[...]
    mean = st[0:1, :] * inv_b
    var = jnp.maximum(st[1:2, :] * inv_b - mean * mean, 0.0)
    scale = bn[bn_row:bn_row + 1, :] * jax.lax.rsqrt(var + BN_EPS)
    shift = bn[bn_row + 1:bn_row + 2, :] - mean * scale
    y = jnp.maximum(h_in_ref[...].astype(jnp.float32) * scale + shift, 0.0)
    out = jnp.dot(y.astype(jnp.bfloat16), w_ref[...],
                  preferred_element_type=jnp.float32) + b_ref[...]
    out_ref[...] = out.astype(out_ref.dtype)


# ----------------------------------------------------------------------------
# Wrappers.
# ----------------------------------------------------------------------------
def _proj_head_fused(x, p, out_dtype):
    batch, in_dim = x.shape
    mlp = p["w1"].shape[1]
    out_pad = p["w3"].shape[1]
    args = (x, p["w1"], p["w2"], p["w3"], p["bn"], p["b3"])

    def full_spec(shape):
        return pl.BlockSpec(shape, lambda: (0,) * len(shape))

    resident = (2 * (in_dim * mlp + mlp * mlp + mlp * out_pad)
                + 4 * batch * (in_dim + 3 * mlp + out_pad)
                + 4 * (4 * mlp + out_pad))
    return pl.pallas_call(
        functools.partial(_fused_kernel, batch=batch),
        out_shape=jax.ShapeDtypeStruct((batch, out_pad), out_dtype),
        grid_spec=pl.GridSpec(
            grid=(),
            in_specs=[full_spec(a.shape) for a in args],
            out_specs=full_spec((batch, out_pad)),
        ),
        compiler_params=pltpu.CompilerParams(
            vmem_limit_bytes=_vmem_limit_bytes(resident)),
    )(*args)


def _proj_head_tiled(x, p, out_dtype, block_b):
    batch, in_dim = x.shape
    mlp = p["w1"].shape[1]
    out_pad = p["w3"].shape[1]
    bt = _pick_batch_tile(batch, block_b)
    nbt = batch // bt

    resident = (2 * max(in_dim * mlp, mlp * mlp, mlp * out_pad)     # resident W
                + 4 * bt * (in_dim + 4 * mlp + out_pad)             # buffered tiles
                + 4 * (4 * mlp + 4 * mlp + out_pad))                # bn / stats / b3
    vmem = _vmem_limit_bytes(resident)

    def cp(sem):
        return pltpu.CompilerParams(dimension_semantics=sem, vmem_limit_bytes=vmem)

    # Pass 1: h1 = x @ W1 per batch tile; accumulate BN1 sum / sumsq.
    h1, stats1 = pl.pallas_call(
        _lin_stats_kernel,
        out_shape=(jax.ShapeDtypeStruct((batch, mlp), jnp.bfloat16),
                   jax.ShapeDtypeStruct((2, mlp), jnp.float32)),
        grid_spec=pl.GridSpec(
            grid=(nbt,),
            in_specs=[pl.BlockSpec((bt, in_dim), lambda i: (i, 0)),
                      pl.BlockSpec((in_dim, mlp), lambda i: (0, 0))],
            out_specs=[pl.BlockSpec((bt, mlp), lambda i: (i, 0)),
                       pl.BlockSpec((2, mlp), lambda i: (0, 0))],
        ),
        compiler_params=cp(("arbitrary",)),
    )(x, p["w1"])

    # Pass 2: apply BN1 + ReLU, h2 = y1 @ W2; accumulate BN2 sum / sumsq.
    h2, stats2 = pl.pallas_call(
        functools.partial(_bn_lin_stats_kernel, batch=batch, bn_row=0),
        out_shape=(jax.ShapeDtypeStruct((batch, mlp), jnp.bfloat16),
                   jax.ShapeDtypeStruct((2, mlp), jnp.float32)),
        grid_spec=pl.GridSpec(
            grid=(nbt,),
            in_specs=[pl.BlockSpec((bt, mlp), lambda i: (i, 0)),
                      pl.BlockSpec((2, mlp), lambda i: (0, 0)),
                      pl.BlockSpec((4, mlp), lambda i: (0, 0)),
                      pl.BlockSpec((mlp, mlp), lambda i: (0, 0))],
            out_specs=[pl.BlockSpec((bt, mlp), lambda i: (i, 0)),
                       pl.BlockSpec((2, mlp), lambda i: (0, 0))],
        ),
        compiler_params=cp(("arbitrary",)),
    )(h1, stats1, p["bn"], p["w2"])

    # Pass 3: apply BN2 + ReLU, out = y2 @ W3 + b3 (no reduction -> parallel).
    out = pl.pallas_call(
        functools.partial(_bn_lin_bias_kernel, batch=batch, bn_row=2),
        out_shape=jax.ShapeDtypeStruct((batch, out_pad), out_dtype),
        grid_spec=pl.GridSpec(
            grid=(nbt,),
            in_specs=[pl.BlockSpec((bt, mlp), lambda i: (i, 0)),
                      pl.BlockSpec((2, mlp), lambda i: (0, 0)),
                      pl.BlockSpec((4, mlp), lambda i: (0, 0)),
                      pl.BlockSpec((mlp, out_pad), lambda i: (0, 0)),
                      pl.BlockSpec((1, out_pad), lambda i: (0, 0))],
            out_specs=pl.BlockSpec((bt, out_pad), lambda i: (i, 0)),
        ),
        compiler_params=cp(("parallel",)),
    )(h2, stats2, p["bn"], p["w3"], p["b3"])
    return out


def proj_head(x, packed, *, out_dtype=jnp.float32, block_b=256,
              force_tiled=None, slice_output=True):
    """ProjHead forward. `packed` comes from pack_params() (one-time prep)."""
    batch, in_dim = x.shape
    mlp = packed["w1"].shape[1]
    out_pad = packed["w3"].shape[1]
    out_dim = packed["out_dim"]

    fused_bytes = (2 * (in_dim * mlp + mlp * mlp + mlp * out_pad)
                   + 4 * batch * (in_dim + 3 * mlp + out_pad))
    use_tiled = (fused_bytes > (24 << 20)) if force_tiled is None else force_tiled

    if use_tiled:
        out = _proj_head_tiled(x, packed, out_dtype, block_b)
    else:
        out = _proj_head_fused(x, packed, out_dtype)

    if slice_output and out_pad != out_dim:
        out = out[:, :out_dim]  # skipped entirely when out_dim % 128 == 0
    return out


# ----------------------------------------------------------------------------
# Parameters and references.
# ----------------------------------------------------------------------------
def init_params(key, in_dim, mlp_dim, out_dim):
    """Matches the PyTorch module's _initialize_weights:
    Linear weights ~ kaiming_normal(mode='fan_out', nonlinearity='relu')
    (std = sqrt(2 / fan_out)), linear biases = 0, BN gamma = 1, beta = 0.
    Weights stored as (in, out) so the kernel computes x @ W."""
    k1, k2, k3 = jax.random.split(key, 3)

    def kaiming(k, fan_in, fan_out):
        std = math.sqrt(2.0 / fan_out)
        return jax.random.normal(k, (fan_in, fan_out), dtype=jnp.float32) * std

    return {
        "w1": kaiming(k1, in_dim, mlp_dim),
        "b1": jnp.zeros((1, mlp_dim), jnp.float32),
        "g1": jnp.ones((1, mlp_dim), jnp.float32),
        "be1": jnp.zeros((1, mlp_dim), jnp.float32),
        "w2": kaiming(k2, mlp_dim, mlp_dim),
        "b2": jnp.zeros((1, mlp_dim), jnp.float32),
        "g2": jnp.ones((1, mlp_dim), jnp.float32),
        "be2": jnp.zeros((1, mlp_dim), jnp.float32),
        "w3": kaiming(k3, mlp_dim, out_dim),
        "b3": jnp.zeros((1, out_dim), jnp.float32),
    }


def pack_params(params):
    """One-time parameter prep (cache the result; do NOT redo per forward):
    bf16 weight casts, lane-padding of the final layer, BN vector packing."""
    out_dim = params["w3"].shape[1]
    out_pad = _round_up(out_dim, 128)
    w3, b3 = params["w3"], params["b3"]
    if out_pad != out_dim:
        w3 = jnp.pad(w3, ((0, 0), (0, out_pad - out_dim)))
        b3 = jnp.pad(b3, ((0, 0), (0, out_pad - out_dim)))
    # b1/b2 are dropped: a per-feature constant added to every row is exactly
    # cancelled by training-mode BN mean subtraction (PyTorch zero-inits them).
    return {
        "w1": params["w1"].astype(jnp.bfloat16),
        "w2": params["w2"].astype(jnp.bfloat16),
        "w3": w3.astype(jnp.bfloat16),
        "b3": b3.astype(jnp.float32),
        "bn": jnp.concatenate([params["g1"], params["be1"],
                               params["g2"], params["be2"]], axis=0),
        "out_dim": out_dim,
    }


def proj_head_ref(x, p):
    """Plain-JAX f32 reference with the exact PyTorch forward semantics."""
    hi = jax.lax.Precision.HIGHEST

    def bn_relu(h, g, b):
        m = jnp.mean(h, axis=0, keepdims=True)
        v = jnp.mean((h - m) ** 2, axis=0, keepdims=True)
        return jnp.maximum((h - m) / jnp.sqrt(v + BN_EPS) * g + b, 0.0)

    h = bn_relu(jnp.dot(x, p["w1"], precision=hi) + p["b1"], p["g1"], p["be1"])
    h = bn_relu(jnp.dot(h, p["w2"], precision=hi) + p["b2"], p["g2"], p["be2"])
    return jnp.dot(h, p["w3"], precision=hi) + p["b3"]


def proj_head_ref_bf16(x, p):
    """Reference emulating the kernel's bf16-at-MXU-boundary numerics."""
    hi = jax.lax.Precision.HIGHEST
    c = lambda a: a.astype(jnp.bfloat16).astype(jnp.float32)

    def bn_relu(h, g, b):
        m = jnp.mean(h, axis=0, keepdims=True)
        v = jnp.mean((h - m) ** 2, axis=0, keepdims=True)
        return jnp.maximum((h - m) / jnp.sqrt(v + BN_EPS) * g + b, 0.0)

    h = bn_relu(jnp.dot(c(x), c(p["w1"]), precision=hi) + p["b1"], p["g1"], p["be1"])
    h = bn_relu(jnp.dot(c(h), c(p["w2"]), precision=hi) + p["b2"], p["g2"], p["be2"])
    return jnp.dot(c(h), c(p["w3"]), precision=hi) + p["b3"]


if __name__ == "__main__":
    # Small but lane/MXU-aligned shapes (all dims multiples of 128, batch 256)
    # so the demo is not a <5%-utilization MXU corner case.
    B, IN_DIM, MLP_DIM, OUT_DIM = 256, 128, 256, 128

    key = jax.random.PRNGKey(0)
    kx, kp = jax.random.split(key)
    x = jax.random.normal(kx, (B, IN_DIM), dtype=jnp.float32)
    params = init_params(kp, IN_DIM, MLP_DIM, OUT_DIM)
    packed = pack_params(params)  # one-time prep, reused across forward calls

    ref32 = proj_head_ref(x, params)
    refbf = proj_head_ref_bf16(x, params)
    scale = float(jnp.max(jnp.abs(ref32))) + 1e-6

    # Exercise and check BOTH execution paths (fused single-block + batch-tiled).
    for force_tiled in (False, True):
        out = proj_head(x, packed, force_tiled=force_tiled, block_b=128)
        out = jax.block_until_ready(out)
        assert out.shape == (B, OUT_DIM), out.shape
        out32 = out.astype(jnp.float32)
        err_bf = float(jnp.max(jnp.abs(out32 - refbf)))
        err_32 = float(jnp.max(jnp.abs(out32 - ref32)))
        assert err_bf <= 0.03 * scale, ("tiled" if force_tiled else "fused", err_bf, scale)
        assert err_32 <= 0.08 * scale, ("tiled" if force_tiled else "fused", err_32, scale)

    print("KERNEL_OK")
</pallas_src>

<mosaic_0001>
module attributes {stable_mosaic.version = 11 : i64} {
  func.func @_fused_kernel(%arg0: memref<256x128xf32, #tpu.memory_space<vmem>>, %arg1: memref<128x256xbf16, #tpu.memory_space<vmem>>, %arg2: memref<256x256xbf16, #tpu.memory_space<vmem>>, %arg3: memref<256x128xbf16, #tpu.memory_space<vmem>>, %arg4: memref<4x256xf32, #tpu.memory_space<vmem>>, %arg5: memref<1x128xf32, #tpu.memory_space<vmem>>, %arg6: memref<256x128xf32, #tpu.memory_space<vmem>>) attributes {dimension_semantics = [], scalar_prefetch = 0 : i64, scratch_operands = 0 : i64, tpu.core_type = #tpu.core_type<tc>} {
    %c0 = arith.constant 0 : index
    %c0_0 = arith.constant 0 : index
    %0 = vector.load %arg4[%c0, %c0_0] : memref<4x256xf32, #tpu.memory_space<vmem>>, vector<4x256xf32>
    %c0_1 = arith.constant 0 : index
    %c0_2 = arith.constant 0 : index
    %1 = vector.load %arg0[%c0_1, %c0_2] : memref<256x128xf32, #tpu.memory_space<vmem>>, vector<256x128xf32>
    %2 = arith.truncf %1 : vector<256x128xf32> to vector<256x128xbf16>
    %c0_3 = arith.constant 0 : index
    %c0_4 = arith.constant 0 : index
    %3 = vector.load %arg1[%c0_3, %c0_4] : memref<128x256xbf16, #tpu.memory_space<vmem>>, vector<128x256xbf16>
    %cst = arith.constant dense<0.000000e+00> : vector<256x256xf32>
    %4 = tpu.matmul %2, %3, %cst {dimension_numbers = #tpu.dot_dimension_numbers<[1], [0], [0], [1], [0, 0, 1, 1], [], []>} : vector<256x128xbf16>, vector<128x256xbf16>, vector<256x256xf32> -> vector<256x256xf32>
    %5 = vector.extract_strided_slice %0 {offsets = [0, 0], sizes = [1, 256], strides = [1, 1]} : vector<4x256xf32> to vector<1x256xf32>
    %6 = vector.extract_strided_slice %0 {offsets = [1, 0], sizes = [1, 256], strides = [1, 1]} : vector<4x256xf32> to vector<1x256xf32>
    %cst_5 = arith.constant dense<0.000000e+00> : vector<256xf32>
    %7 = vector.multi_reduction <add>, %4, %cst_5 [0] : vector<256x256xf32> to vector<256xf32>
    %8 = vector.shape_cast %7 : vector<256xf32> to vector<1x256xf32>
    %9 = arith.mulf %4, %4 : vector<256x256xf32>
    %cst_6 = arith.constant dense<0.000000e+00> : vector<256xf32>
    %10 = vector.multi_reduction <add>, %9, %cst_6 [0] : vector<256x256xf32> to vector<256xf32>
    %11 = vector.shape_cast %10 : vector<256xf32> to vector<1x256xf32>
    %cst_7 = arith.constant 3.906250e-03 : f32
    %12 = vector.broadcast %cst_7 : f32 to vector<1x256xf32>
    %13 = arith.mulf %8, %12 : vector<1x256xf32>
    %cst_8 = arith.constant 3.906250e-03 : f32
    %14 = vector.broadcast %cst_8 : f32 to vector<1x256xf32>
    %15 = arith.mulf %11, %14 : vector<1x256xf32>
    %16 = arith.mulf %13, %13 : vector<1x256xf32>
    %17 = arith.subf %15, %16 : vector<1x256xf32>
    %cst_9 = arith.constant 0.000000e+00 : f32
    %18 = vector.broadcast %cst_9 : f32 to vector<1x256xf32>
    %19 = arith.maximumf %17, %18 : vector<1x256xf32>
    %cst_10 = arith.constant 9.99999974E-6 : f32
    %20 = vector.broadcast %cst_10 : f32 to vector<1x256xf32>
    %21 = arith.addf %19, %20 : vector<1x256xf32>
    %22 = math.rsqrt %21 : vector<1x256xf32>
    %23 = arith.mulf %5, %22 : vector<1x256xf32>
    %24 = arith.mulf %13, %23 : vector<1x256xf32>
    %25 = arith.subf %6, %24 : vector<1x256xf32>
    %26 = vector.broadcast %23 : vector<1x256xf32> to vector<256x256xf32>
    %27 = arith.mulf %4, %26 : vector<256x256xf32>
    %28 = vector.broadcast %25 : vector<1x256xf32> to vector<256x256xf32>
    %29 = arith.addf %27, %28 : vector<256x256xf32>
    %cst_11 = arith.constant 0.000000e+00 : f32
    %30 = vector.broadcast %cst_11 : f32 to vector<256x256xf32>
    %31 = arith.maximumf %29, %30 : vector<256x256xf32>
    %32 = arith.truncf %31 : vector<256x256xf32> to vector<256x256xbf16>
    %c0_12 = arith.constant 0 : index
    %c0_13 = arith.constant 0 : index
    %33 = vector.load %arg2[%c0_12, %c0_13] : memref<256x256xbf16, #tpu.memory_space<vmem>>, vector<256x256xbf16>
    %cst_14 = arith.constant dense<0.000000e+00> : vector<256x256xf32>
    %34 = tpu.matmul %32, %33, %cst_14 {dimension_numbers = #tpu.dot_dimension_numbers<[1], [0], [0], [1], [0, 0, 1, 1], [], []>} : vector<256x256xbf16>, vector<256x256xbf16>, vector<256x256xf32> -> vector<256x256xf32>
    %35 = vector.extract_strided_slice %0 {offsets = [2, 0], sizes = [1, 256], strides = [1, 1]} : vector<4x256xf32> to vector<1x256xf32>
    %36 = vector.extract_strided_slice %0 {offsets = [3, 0], sizes = [1, 256], strides = [1, 1]} : vector<4x256xf32> to vector<1x256xf32>
    %cst_15 = arith.constant dense<0.000000e+00> : vector<256xf32>
    %37 = vector.multi_reduction <add>, %34, %cst_15 [0] : vector<256x256xf32> to vector<256xf32>
    %38 = vector.shape_cast %37 : vector<256xf32> to vector<1x256xf32>
    %39 = arith.mulf %34, %34 : vector<256x256xf32>
    %cst_16 = arith.constant dense<0.000000e+00> : vector<256xf32>
    %40 = vector.multi_reduction <add>, %39, %cst_16 [0] : vector<256x256xf32> to vector<256xf32>
    %41 = vector.shape_cast %40 : vector<256xf32> to vector<1x256xf32>
    %cst_17 = arith.constant 3.906250e-03 : f32
    %42 = vector.broadcast %cst_17 : f32 to vector<1x256xf32>
    %43 = arith.mulf %38, %42 : vector<1x256xf32>
    %cst_18 = arith.constant 3.906250e-03 : f32
    %44 = vector.broadcast %cst_18 : f32 to vector<1x256xf32>
    %45 = arith.mulf %41, %44 : vector<1x256xf32>
    %46 = arith.mulf %43, %43 : vector<1x256xf32>
    %47 = arith.subf %45, %46 : vector<1x256xf32>
    %cst_19 = arith.constant 0.000000e+00 : f32
    %48 = vector.broadcast %cst_19 : f32 to vector<1x256xf32>
    %49 = arith.maximumf %47, %48 : vector<1x256xf32>
    %cst_20 = arith.constant 9.99999974E-6 : f32
    %50 = vector.broadcast %cst_20 : f32 to vector<1x256xf32>
    %51 = arith.addf %49, %50 : vector<1x256xf32>
    %52 = math.rsqrt %51 : vector<1x256xf32>
    %53 = arith.mulf %35, %52 : vector<1x256xf32>
    %54 = arith.mulf %43, %53 : vector<1x256xf32>
    %55 = arith.subf %36, %54 : vector<1x256xf32>
    %56 = vector.broadcast %53 : vector<1x256xf32> to vector<256x256xf32>
    %57 = arith.mulf %34, %56 : vector<256x256xf32>
    %58 = vector.broadcast %55 : vector<1x256xf32> to vector<256x256xf32>
    %59 = arith.addf %57, %58 : vector<256x256xf32>
    %cst_21 = arith.constant 0.000000e+00 : f32
    %60 = vector.broadcast %cst_21 : f32 to vector<256x256xf32>
    %61 = arith.maximumf %59, %60 : vector<256x256xf32>
    %62 = arith.truncf %61 : vector<256x256xf32> to vector<256x256xbf16>
    %c0_22 = arith.constant 0 : index
    %c0_23 = arith.constant 0 : index
    %63 = vector.load %arg3[%c0_22, %c0_23] : memref<256x128xbf16, #tpu.memory_space<vmem>>, vector<256x128xbf16>
    %cst_24 = arith.constant dense<0.000000e+00> : vector<256x128xf32>
    %64 = tpu.matmul %62, %63, %cst_24 {dimension_numbers = #tpu.dot_dimension_numbers<[1], [0], [0], [1], [0, 0, 1, 1], [], []>} : vector<256x256xbf16>, vector<256x128xbf16>, vector<256x128xf32> -> vector<256x128xf32>
    %c0_25 = arith.constant 0 : index
    %c0_26 = arith.constant 0 : index
    %65 = vector.load %arg5[%c0_25, %c0_26] : memref<1x128xf32, #tpu.memory_space<vmem>>, vector<1x128xf32>
    %66 = vector.broadcast %65 : vector<1x128xf32> to vector<256x128xf32>
    %67 = arith.addf %64, %66 : vector<256x128xf32>
    %c0_27 = arith.constant 0 : index
    %c0_28 = arith.constant 0 : index
    %68 = vector.load %arg6[%c0_27, %c0_28] : memref<256x128xf32, #tpu.memory_space<vmem>>, vector<256x128xf32>
    tpu.vector_store %arg6[%c0_27, %c0_28], %67 {strides = array<i32>} : memref<256x128xf32, #tpu.memory_space<vmem>>, vector<256x128xf32>,
    return
  }
}

</mosaic_0001>

<bundles_post_ra>
// kernel: tpu_custom_call.1
= control target key start
LH: loop header
LB: loop body
LE: loop exit
PB: predicated region body
PF: predicated region fallthrough
CT: control target
= control target key end

     0   :  { %11 = vsyncpa [#allocation3], 0  ;;  %s4072_s0 = inlined_call_operand.hbm [shape: f32[256,128], index: 0, kind: input, shape index: {}]   ;;  %s4073_s1 = inlined_call_operand.hbm [shape: bf16[128,256], index: 1, kind: input, shape index: {}]   ;;  %s4074_s2 = inlined_call_operand.hbm [shape: bf16[256,256], index: 2, kind: input, shape index: {}]   ;;  %s4075_s3 = inlined_call_operand.hbm [shape: bf16[256,128], index: 3, kind: input, shape index: {}]   ;;  %s4076_s4 = inlined_call_operand.hbm [shape: f32[4,256], index: 4, kind: input, shape index: {}]   ;;  %s4077_s5 = inlined_call_operand.vmem [shape: f32[1,128], index: 5, kind: input, shape index: {}]   ;;  %s4078_s6 = inlined_call_operand.hbm [shape: f32[256,128], index: 6, kind: output, shape index: {}]  }
   0x1   :  { %12 = vsyncpa [#allocation6], 0 }
   0x2   :  { %13 = vsyncpa [#allocation9], 0 }
   0x3   :  { %14 = vsyncpa [#allocation4], 0  ;;  %s2593_s21 = smov [#allocation5]   ;;  %s2594_s23 = smov [#allocation8]  }
   0x4   :  { %s32_s22 = sshll.u32 %s2593_s21, 4  ;;  %s56_s24 = sshll.u32 %s2594_s23, 4  ;;  %s33_s22 = int_to_ptr.vmem [resolvable:$true] %s32_s22  ;;  %s57_s24 = int_to_ptr.vmem [resolvable:$true] %s56_s24 }
   0x5   :  { %s2473_s25 = scalar_lea.vmem %s33_s22, 2048  ;;  %p2478_p1 = scmp.lt.s32.totalorder %s33_s22, %s33_s22 }
   0x6   :  { %p2474_p0 = scmp.ne.s32.totalorder %s33_s22, %s2473_s25  ;;  %p2479_p2 = scmp.lt.s32.totalorder %s2473_s25, %s2473_s25 }
   0x8   :  { %p2480_p3 = por %p2479_p2, %p2478_p1 }
   0xa   :  { %p2481_p4 = pnand %p2480_p3, %p2474_p0 }
   0xc   :  { %2484 = shalt.err (!%p2481_p4)
}
   0xd   :  { %s2595_s26 = smov 128   ;;  %s2596_s27 = smov 8  }
   0xe   :  { %38 = dma.hbm_to_vmem [thread:$0]  %s4073_s1, 2048, %s33_s22, [#allocation6], %s2595_s26, %s2595_s26, %s2596_s27  }
   0xf   :  { %s2493_s30 = scalar_lea.vmem %s57_s24, 2048  ;;  %p2498_p6 = scmp.lt.s32.totalorder %s57_s24, %s57_s24 }
  0x10   :  { %p2494_p5 = scmp.ne.s32.totalorder %s57_s24, %s2493_s30  ;;  %p2499_p7 = scmp.lt.s32.totalorder %s2493_s30, %s2493_s30 }
  0x12   :  { %p2500_p8 = por %p2499_p7, %p2498_p6 }
  0x14   :  { %p2501_p9 = pnand %p2500_p8, %p2494_p5 }
  0x16   :  { %2504 = shalt.err (!%p2501_p9)
}
  0x17   :  { %s2597_s7 = smov 64   ;;  %s2598_s8 = smov 4  }
  0x18   :  { %62 = dma.hbm_to_vmem [thread:$0]  %s4075_s3, 2048, %s57_s24, [#allocation9], %s2597_s7, %s2597_s7, %s2598_s8  }
  0x19   :  { %s2599_s11 = smov [#allocation2]   ;;  %s2600_s13 = smov [#allocation7]  }
  0x1a   :  { %s20_s12 = sshll.u32 %s2599_s11, 4  ;;  %s44_s14 = sshll.u32 %s2600_s13, 4  ;;  %s21_s12 = int_to_ptr.vmem [resolvable:$true] %s20_s12  ;;  %s45_s14 = int_to_ptr.vmem [resolvable:$true] %s44_s14 }
  0x1b   :  { %s2513_s1 = scalar_lea.vmem %s21_s12, 4096  ;;  %p2518_p11 = scmp.lt.s32.totalorder %s21_s12, %s21_s12 }
  0x1c   :  { %p2514_p10 = scmp.ne.s32.totalorder %s21_s12, %s2513_s1  ;;  %p2519_p12 = scmp.lt.s32.totalorder %s2513_s1, %s2513_s1 }
  0x1e   :  { %p2520_p13 = por %p2519_p12, %p2518_p11 }
  0x20   :  { %p2521_p0 = pnand %p2520_p13, %p2514_p10 }
  0x22   :  { %2524 = shalt.err (!%p2521_p0)
}
  0x23   :  { %26 = dma.hbm_to_vmem [thread:$0]  %s4072_s0, 4096, %s21_s12, [#allocation3], %s2595_s26, %s2595_s26, %s2596_s27  }
  0x24   :  { %s2533_s3 = scalar_lea.vmem %s45_s14, 4096  ;;  %p2538_p2 = scmp.lt.s32.totalorder %s45_s14, %s45_s14 }
  0x25   :  { %p2534_p1 = scmp.ne.s32.totalorder %s45_s14, %s2533_s3  ;;  %p2539_p3 = scmp.lt.s32.totalorder %s2533_s3, %s2533_s3 }
  0x27   :  { %p2540_p4 = por %p2539_p3, %p2538_p2 }
  0x29   :  { %p2541_p5 = pnand %p2540_p4, %p2534_p1 }
  0x2b   :  { %2544 = shalt.err (!%p2541_p5)
}
  0x2c   :  { %50 = dma.hbm_to_vmem [thread:$0]  %s4074_s2, 4096, %s45_s14, [#allocation6], %s2595_s26, %s2595_s26, %s2596_s27  }
  0x2d   :  { %s2601_s19 = smov [#allocation10]  }
  0x2e   :  { %s69_s20 = sshll.u32 %s2601_s19, 4  ;;  %s70_s20 = int_to_ptr.vmem [resolvable:$true] %s69_s20 }
  0x2f   :  { %s2553_s21 = scalar_lea.vmem %s70_s20, 128  ;;  %p2558_p7 = scmp.lt.s32.totalorder %s70_s20, %s70_s20 }
  0x30   :  { %p2554_p6 = scmp.ne.s32.totalorder %s70_s20, %s2553_s21  ;;  %p2559_p8 = scmp.lt.s32.totalorder %s2553_s21, %s2553_s21 }
  0x32   :  { %p2560_p9 = por %p2559_p8, %p2558_p7 }
  0x34   :  { %p2561_p10 = pnand %p2560_p9, %p2554_p6 }
  0x36   :  { %2564 = shalt.err (!%p2561_p10)
}
  0x37   :  { %72 = dma.hbm_to_vmem [thread:$0]  %s4076_s4, 128, %s70_s20, [#allocation9]  }
  0x38   :  { %2585 = dma.done.wait [#allocation3], 4096  }
  0x39   :  { %2586 = vsyncadd [#allocation3], 4294963200 }
  0x3a   :  { %2587 = dma.done.wait [#allocation6], 6144  }
  0x3b   :  { %2588 = vsyncadd [#allocation6], 4294961152 }
  0x3c   :  { %2589 = dma.done.wait [#allocation9], 2176  }
  0x3d   :  { %2590 = vsyncadd [#allocation9], 4294965120  ;;  %v2602_v0 = vmov 0   ;;  %v2368_v1 = vld [vmem:[#allocation5 + $0x74] ss:$8 sps:$4 sm:$0xff]   ;;  %v92_v17 = vld [vmem:[#allocation2] sm:$0xff] }
  0x3e   :  { %268 = vmatprep.mubr.bf16.mxu0 %v2602_v0  ;;  %348 = vmatprep.mubr.bf16.mxu1 %v2602_v0  ;;  %v2370_v2 = vld [vmem:[#allocation5 + $0x70] ss:$8 sps:$4 sm:$0xff]   ;;  %v2371_v3 = vld [vmem:[#allocation5 + $0x64] ss:$8 sps:$4 sm:$0xff]   ;;  %v2373_v4 = vld [vmem:[#allocation5 + $0x60] ss:$8 sps:$4 sm:$0xff]  }
  0x3f   :  { %236 = vmatprep.subr.bf16.mxu0 %v2368_v1  ;;  %2341 = vmatprep.subr.bf16.mxu1 %v2368_v1  ;;  %v2374_v5 = vld [vmem:[#allocation5 + $0x54] ss:$8 sps:$4 sm:$0xff]   ;;  %v2376_v6 = vld [vmem:[#allocation5 + $0x50] ss:$8 sps:$4 sm:$0xff]   ;;  %v2377_v7 = vld [vmem:[#allocation5 + $0x44] ss:$8 sps:$4 sm:$0xff]  }
  0x40   :  { %237 = vmatpush1.bf16.msra.mxu0 %v2370_v2  ;;  %2349 = vmatpush1.bf16.msra.mxu1 %v2370_v2  ;;  %v2379_v8 = vld [vmem:[#allocation5 + $0x40] ss:$8 sps:$4 sm:$0xff]   ;;  %v2380_v9 = vld [vmem:[#allocation5 + $0x34] ss:$8 sps:$4 sm:$0xff]   ;;  %v2382_v10 = vld [vmem:[#allocation5 + $0x30] ss:$8 sps:$4 sm:$0xff]  }
  0x41   :  { %238 = vmatprep.subr.bf16.mxu0 %v2371_v3  ;;  %2342 = vmatprep.subr.bf16.mxu1 %v2371_v3  ;;  %v2383_v11 = vld [vmem:[#allocation5 + $0x24] ss:$8 sps:$4 sm:$0xff]   ;;  %v2385_v12 = vld [vmem:[#allocation5 + $0x20] ss:$8 sps:$4 sm:$0xff]   ;;  %v2386_v13 = vld [vmem:[#allocation5 + $0x14] ss:$8 sps:$4 sm:$0xff]  }
  0x42   :  { %v2388_v14 = vld [vmem:[#allocation5 + $0x10] ss:$8 sps:$4 sm:$0xff]   ;;  %v2389_v15 = vld [vmem:[#allocation5 + $0x4] ss:$8 sps:$4 sm:$0xff]   ;;  %v2391_v16 = vld [vmem:[#allocation5] ss:$8 sps:$4 sm:$0xff]  }
  0x43   :  { %v93_v18 = vld [vmem:[#allocation2 + $0x8] sm:$0xff]  ;;  %v108_v19 = vld [vmem:[#allocation2 + $0x80] sm:$0xff]  ;;  %v94_v23 = vld [vmem:[#allocation2 + $0x10] sm:$0xff] }
  0x44   :  { %239 = vmatpush1.bf16.msra.mxu0 %v2373_v4  ;;  %2350 = vmatpush1.bf16.msra.mxu1 %v2373_v4  ;;  %v109_v20 = vld [vmem:[#allocation2 + $0x88] sm:$0xff]  ;;  %v124_v21 = vpack.c.bf16 %v93_v18, %v92_v17  ;;  %v95_v24 = vld [vmem:[#allocation2 + $0x18] sm:$0xff]  ;;  %v110_v25 = vld [vmem:[#allocation2 + $0x90] sm:$0xff] }
  0x45   :  { %240 = vmatprep.subr.bf16.mxu0 %v2374_v5  ;;  %2343 = vmatprep.subr.bf16.mxu1 %v2374_v5  ;;  %v132_v22 = vpack.c.bf16 %v109_v20, %v108_v19  ;;  %v111_v26 = vld [vmem:[#allocation2 + $0x98] sm:$0xff]  ;;  %v125_v27 = vpack.c.bf16 %v95_v24, %v94_v23  ;;  %v96_v29 = vld [vmem:[#allocation2 + $0x20] sm:$0xff]  ;;  %v97_v30 = vld [vmem:[#allocation2 + $0x28] sm:$0xff] }
  0x46   :  { %v133_v28 = vpack.c.bf16 %v111_v26, %v110_v25  ;;  %v112_v31 = vld [vmem:[#allocation2 + $0xa0] sm:$0xff]  ;;  %v113_v32 = vld [vmem:[#allocation2 + $0xa8] sm:$0xff]  ;;  %v126_v33 = vpack.c.bf16 %v97_v30, %v96_v29  ;;  %v98_v35 = vld [vmem:[#allocation2 + $0x30] sm:$0xff] }
  0x47   :  { %v134_v34 = vpack.c.bf16 %v113_v32, %v112_v31  ;;  %v99_v36 = vld [vmem:[#allocation2 + $0x38] sm:$0xff]  ;;  %v114_v37 = vld [vmem:[#allocation2 + $0xb0] sm:$0xff]  ;;  %v100_v41 = vld [vmem:[#allocation2 + $0x40] sm:$0xff] }
  0x48   :  { %241 = vmatpush1.bf16.msra.mxu0 %v2376_v6  ;;  %2351 = vmatpush1.bf16.msra.mxu1 %v2376_v6  ;;  %v115_v38 = vld [vmem:[#allocation2 + $0xb8] sm:$0xff]  ;;  %v127_v39 = vpack.c.bf16 %v99_v36, %v98_v35  ;;  %v101_v42 = vld [vmem:[#allocation2 + $0x48] sm:$0xff]  ;;  %v116_v43 = vld [vmem:[#allocation2 + $0xc0] sm:$0xff] }
  0x49   :  { %242 = vmatprep.subr.bf16.mxu0 %v2377_v7  ;;  %2344 = vmatprep.subr.bf16.mxu1 %v2377_v7  ;;  %v135_v40 = vpack.c.bf16 %v115_v38, %v114_v37  ;;  %v117_v44 = vld [vmem:[#allocation2 + $0xc8] sm:$0xff]  ;;  %v128_v45 = vpack.c.bf16 %v101_v42, %v100_v41  ;;  %v102_v47 = vld [vmem:[#allocation2 + $0x50] sm:$0xff]  ;;  %v103_v48 = vld [vmem:[#allocation2 + $0x58] sm:$0xff] }
  0x4a   :  { %v136_v46 = vpack.c.bf16 %v117_v44, %v116_v43  ;;  %v118_v49 = vld [vmem:[#allocation2 + $0xd0] sm:$0xff]  ;;  %v119_v50 = vld [vmem:[#allocation2 + $0xd8] sm:$0xff]  ;;  %v129_v51 = vpack.c.bf16 %v103_v48, %v102_v47  ;;  %v104_v53 = vld [vmem:[#allocation2 + $0x60] sm:$0xff] }
  0x4b   :  { %v137_v52 = vpack.c.bf16 %v119_v50, %v118_v49  ;;  %v105_v54 = vld [vmem:[#allocation2 + $0x68] sm:$0xff]  ;;  %v120_v55 = vld [vmem:[#allocation2 + $0xe0] sm:$0xff]  ;;  %v106_v59 = vld [vmem:[#allocation2 + $0x70] sm:$0xff] }
  0x4c   :  { %243 = vmatpush1.bf16.msra.mxu0 %v2379_v8  ;;  %2352 = vmatpush1.bf16.msra.mxu1 %v2379_v8  ;;  %v121_v56 = vld [vmem:[#allocation2 + $0xe8] sm:$0xff]  ;;  %v130_v57 = vpack.c.bf16 %v105_v54, %v104_v53  ;;  %v107_v60 = vld [vmem:[#allocation2 + $0x78] sm:$0xff]  ;;  %v122_v61 = vld [vmem:[#allocation2 + $0xf0] sm:$0xff] }
  0x4d   :  { %244 = vmatprep.subr.bf16.mxu0 %v2380_v9  ;;  %2345 = vmatprep.subr.bf16.mxu1 %v2380_v9  ;;  %v138_v58 = vpack.c.bf16 %v121_v56, %v120_v55  ;;  %v123_v62 = vld [vmem:[#allocation2 + $0xf8] sm:$0xff]  ;;  %v131_v63 = vpack.c.bf16 %v107_v60, %v106_v59  ;;  %v2397_v4 = vld [vmem:[#allocation7 + $0x64] ss:$8 sps:$4 sm:$0xff]   ;;  %v2395_v5 = vld [vmem:[#allocation7 + $0x60] ss:$8 sps:$4 sm:$0xff]  }
  0x4e   :  { %v139_v1 = vpack.c.bf16 %v123_v62, %v122_v61  ;;  %v2394_v2 = vld [vmem:[#allocation7 + $0x74] ss:$8 sps:$4 sm:$0xff]   ;;  %v2392_v3 = vld [vmem:[#allocation7 + $0x70] ss:$8 sps:$4 sm:$0xff]   ;;  %v2403_v8 = vld [vmem:[#allocation7 + $0x44] ss:$8 sps:$4 sm:$0xff]  }
  0x4f   :  { %v2400_v6 = vld [vmem:[#allocation7 + $0x54] ss:$8 sps:$4 sm:$0xff]   ;;  %v2398_v7 = vld [vmem:[#allocation7 + $0x50] ss:$8 sps:$4 sm:$0xff]   ;;  %v2409_v19 = vld [vmem:[#allocation7 + $0x24] ss:$8 sps:$4 sm:$0xff]  }
  0x50   :  { %245 = vmatpush1.bf16.msra.mxu0 %v2382_v10  ;;  %2353 = vmatpush1.bf16.msra.mxu1 %v2382_v10  ;;  %v2401_v10 = vld [vmem:[#allocation7 + $0x40] ss:$8 sps:$4 sm:$0xff]   ;;  %v2412_v25 = vld [vmem:[#allocation7 + $0x14] ss:$8 sps:$4 sm:$0xff]   ;;  %v2415_v31 = vld [vmem:[#allocation7 + $0x4] ss:$8 sps:$4 sm:$0xff]  }
  0x51   :  { %246 = vmatprep.subr.bf16.mxu0 %v2383_v11  ;;  %2346 = vmatprep.subr.bf16.mxu1 %v2383_v11  ;;  %v2418_v37 = vld [vmem:[#allocation7 + $0xf4] ss:$8 sps:$4 sm:$0xff]   ;;  %v2421_v43 = vld [vmem:[#allocation7 + $0xe4] ss:$8 sps:$4 sm:$0xff]   ;;  %v2425_v60 = vld [vmem:[#allocation7 + $0xc0] ss:$8 sps:$4 sm:$0xff]  }
  0x52   :  { %v2424_v49 = vld [vmem:[#allocation7 + $0xd4] ss:$8 sps:$4 sm:$0xff]   ;;  %v2427_v56 = vld [vmem:[#allocation7 + $0xc4] ss:$8 sps:$4 sm:$0xff]  }
  0x54   :  { %247 = vmatpush1.bf16.msra.mxu0 %v2385_v12  ;;  %2354 = vmatpush1.bf16.msra.mxu1 %v2385_v12 }
  0x55   :  { %248 = vmatprep.subr.bf16.mxu0 %v2386_v13  ;;  %2347 = vmatprep.subr.bf16.mxu1 %v2386_v13  ;;  %v2406_v13 = vld [vmem:[#allocation7 + $0x34] ss:$8 sps:$4 sm:$0xff]  }
  0x58   :  { %249 = vmatpush1.bf16.msra.mxu0 %v2388_v14  ;;  %2355 = vmatpush1.bf16.msra.mxu1 %v2388_v14 }
  0x59   :  { %250 = vmatprep.subr.bf16.mxu0 %v2389_v15  ;;  %2348 = vmatprep.subr.bf16.mxu1 %v2389_v15 }
  0x5c   :  { %251 = vmatpush1.bf16.msra.mxu0 %v2391_v16  ;;  %2356 = vmatpush1.bf16.msra.mxu1 %v2391_v16  ;;  %v2404_v16 = vld [vmem:[#allocation7 + $0x30] ss:$8 sps:$4 sm:$0xff]  }
  0x5d   :  { %1122 = vmatprep.subr.bf16.mxu1 %v2394_v2 }
  0x5f   :  { %269 = vmatmul.mubr.bf16.vlgmr.msra.gmra.mxu0 %v124_v21  ;;  %349 = vmatmul.mubr.bf16.vlgmr.msra.gmra.mxu1 %v132_v22  ;;  %v2407_v22 = vld [vmem:[#allocation7 + $0x20] ss:$8 sps:$4 sm:$0xff]  }
  0x60   :  { %278 = vmatprep.mubr.bf16.mxu0 %v2602_v0  ;;  %358 = vmatprep.mubr.bf16.mxu1 %v2602_v0 }
  0x61   :  { %1123 = vmatpush1.bf16.msra.mxu1 %v2392_v3 }
  0x62   :  { %1124 = vmatprep.subr.bf16.mxu1 %v2397_v4 }
  0x65   :  { %1125 = vmatpush1.bf16.msra.mxu1 %v2395_v5 }
  0x66   :  { %1126 = vmatprep.subr.bf16.mxu1 %v2400_v6 }
  0x67   :  { %279 = vmatmul.mubr.bf16.gmra.mxu0 %v125_v27  ;;  %359 = vmatmul.mubr.bf16.gmra.mxu1 %v133_v28  ;;  %v2410_v28 = vld [vmem:[#allocation7 + $0x10] ss:$8 sps:$4 sm:$0xff]  }
  0x68   :  { %288 = vmatprep.mubr.bf16.mxu0 %v2602_v0  ;;  %368 = vmatprep.mubr.bf16.mxu1 %v2602_v0 }
  0x69   :  { %1127 = vmatpush1.bf16.msra.mxu1 %v2398_v7 }
  0x6a   :  { %1128 = vmatprep.subr.bf16.mxu1 %v2403_v8 }
  0x6d   :  { %1129 = vmatpush1.bf16.msra.mxu1 %v2401_v10  ;;  %v2430_v10 = vld [vmem:[#allocation7 + $0xb4] ss:$8 sps:$4 sm:$0xff]  }
  0x6e   :  { %1130 = vmatprep.subr.bf16.mxu1 %v2406_v13 }
  0x6f   :  { %289 = vmatmul.mubr.bf16.gmra.mxu0 %v126_v33  ;;  %369 = vmatmul.mubr.bf16.gmra.mxu1 %v134_v34  ;;  %v2413_v34 = vld [vmem:[#allocation7] ss:$8 sps:$4 sm:$0xff]  }
  0x70   :  { %298 = vmatprep.mubr.bf16.mxu0 %v2602_v0  ;;  %378 = vmatprep.mubr.bf16.mxu1 %v2602_v0 }
  0x71   :  { %1131 = vmatpush1.bf16.msra.mxu1 %v2404_v16 }
  0x72   :  { %1132 = vmatprep.subr.bf16.mxu1 %v2409_v19 }
  0x75   :  { %1133 = vmatpush1.bf16.msra.mxu1 %v2407_v22  ;;  %v2428_v22 = vld [vmem:[#allocation7 + $0xb0] ss:$8 sps:$4 sm:$0xff]  }
  0x76   :  { %1134 = vmatprep.subr.bf16.mxu1 %v2412_v25 }
  0x77   :  { %299 = vmatmul.mubr.bf16.gmra.mxu0 %v127_v39  ;;  %379 = vmatmul.mubr.bf16.gmra.mxu1 %v135_v40  ;;  %v2416_v40 = vld [vmem:[#allocation7 + $0xf0] ss:$8 sps:$4 sm:$0xff]  }
  0x78   :  { %308 = vmatprep.mubr.bf16.mxu0 %v2602_v0  ;;  %388 = vmatprep.mubr.bf16.mxu1 %v2602_v0 }
  0x79   :  { %1135 = vmatpush1.bf16.msra.mxu1 %v2410_v28 }
  0x7a   :  { %1136 = vmatprep.subr.bf16.mxu1 %v2415_v31 }
  0x7d   :  { %1137 = vmatpush1.bf16.msra.mxu1 %v2413_v34 }
  0x7e   :  { %1138 = vmatprep.subr.bf16.mxu1 %v2418_v37 }
  0x7f   :  { %309 = vmatmul.mubr.bf16.gmra.mxu0 %v128_v45  ;;  %389 = vmatmul.mubr.bf16.gmra.mxu1 %v136_v46  ;;  %v2419_v46 = vld [vmem:[#allocation7 + $0xe0] ss:$8 sps:$4 sm:$0xff]  }
  0x80   :  { %318 = vmatprep.mubr.bf16.mxu0 %v2602_v0  ;;  %398 = vmatprep.mubr.bf16.mxu1 %v2602_v0 }
  0x81   :  { %1139 = vmatpush2.bf16.msra.mxu1 %v2416_v40 }
  0x82   :  { %1140 = vmatprep.subr.bf16.mxu1 %v2421_v43 }
  0x85   :  { %1141 = vmatpush2.bf16.msra.mxu1 %v2419_v46 }
  0x86   :  { %1142 = vmatprep.subr.bf16.mxu1 %v2424_v49 }
  0x87   :  { %319 = vmatmul.mubr.bf16.gmra.mxu0 %v129_v51  ;;  %399 = vmatmul.mubr.bf16.gmra.mxu1 %v137_v52  ;;  %v2422_v52 = vld [vmem:[#allocation7 + $0xd0] ss:$8 sps:$4 sm:$0xff]  }
  0x88   :  { %328 = vmatprep.mubr.bf16.mxu0 %v2602_v0  ;;  %408 = vmatprep.mubr.bf16.mxu1 %v2602_v0 }
  0x89   :  { %1143 = vmatpush2.bf16.msra.mxu1 %v2422_v52 }
  0x8a   :  { %1144 = vmatprep.subr.bf16.mxu1 %v2427_v56 }
  0x8d   :  { %1145 = vmatpush2.bf16.msra.mxu1 %v2425_v60 }
  0x8e   :  { %1146 = vmatprep.subr.bf16.mxu1 %v2430_v10 }
  0x8f   :  { %329 = vmatmul.mubr.bf16.gmra.mxu0 %v130_v57  ;;  %409 = vmatmul.mubr.bf16.gmra.mxu1 %v138_v58 }
  0x90   :  { %338 = vmatprep.mubr.bf16.mxu0 %v2602_v0  ;;  %418 = vmatprep.mubr.bf16.mxu1 %v2602_v0 }
  0x91   :  { %1147 = vmatpush2.bf16.msra.mxu1 %v2428_v22 }
  0x97   :  { %339 = vmatmul.mubr.bf16.gmra.mxu0 %v131_v63  ;;  %419 = vmatmul.mubr.bf16.gmra.mxu1 %v139_v1 }
 0x11f   :  { %v2679_v0 = vpop.f32.mrf.mxu0  ;;  %v2681_v9 = vpop.f32.mrf.mxu1 }
 0x120   :  { %v503_v61 = vmul.f32 %v2679_v0, %v2679_v0 }
 0x121   :  { %v2683_v11 = vpop.f32.mrf.mxu0  ;;  %v2685_v12 = vpop.f32.mrf.mxu1 }
 0x122   :  { %4134 = vst [vmem:[#allocation16_spill] sm:$0xff] %v2685_v12  ;;  %v504_v1 = vmul.f32 %v2683_v11, %v2683_v11 }
 0x123   :  { %v2687_v14 = vpop.f32.mrf.mxu0  ;;  %v2689_v15 = vpop.f32.mrf.mxu1 }
 0x124   :  { %v505_v55 = vmul.f32 %v2687_v14, %v2687_v14  ;;  %v429_v62 = vadd.f32 %v2687_v14, %v2679_v0 }
 0x125   :  { %v2691_v17 = vpop.f32.mrf.mxu0  ;;  %v2693_v18 = vpop.f32.mrf.mxu1 }
 0x126   :  { %4135 = vst [vmem:[#allocation17_spill] sm:$0xff] %v2693_v18  ;;  %v506_v57 = vmul.f32 %v2691_v17, %v2691_v17  ;;  %v567_v4 = vadd.f32 %v505_v55, %v503_v61  ;;  %v466_v5 = vadd.f32 %v2691_v17, %v2683_v11 }
 0x127   :  { %v2695_v20 = vpop.f32.mrf.mxu0  ;;  %v2697_v21 = vpop.f32.mrf.mxu1 }
 0x128   :  { %v507_v63 = vmul.f32 %v2695_v20, %v2695_v20  ;;  %v430_v6 = vadd.f32 %v429_v62, %v2695_v20  ;;  %v604_v13 = vadd.f32 %v506_v57, %v504_v1  ;;  %v2433_v57 = vld [vmem:[#allocation7 + $0xa4] ss:$8 sps:$4 sm:$0xff]  }
 0x129   :  { %v2699_v23 = vpop.f32.mrf.mxu0  ;;  %v2701_v24 = vpop.f32.mrf.mxu1  ;;  %1148 = vmatprep.subr.bf16.mxu1 %v2433_v57 }
 0x12a   :  { %v508_v2 = vmul.f32 %v2699_v23, %v2699_v23  ;;  %v568_v25 = vadd.f32 %v567_v4, %v507_v63  ;;  %v467_v28 = vadd.f32 %v466_v5, %v2699_v23  ;;  %v2431_v63 = vld [vmem:[#allocation7 + $0xa0] ss:$8 sps:$4 sm:$0xff]  }
 0x12b   :  { %v2703_v26 = vpop.f32.mrf.mxu0  ;;  %v2705_v27 = vpop.f32.mrf.mxu1  ;;  %1149 = vmatpush2.bf16.msra.mxu1 %v2431_v63 }
 0x12c   :  { %v509_v7 = vmul.f32 %v2703_v26, %v2703_v26  ;;  %v431_v31 = vadd.f32 %v430_v6, %v2703_v26  ;;  %v605_v37 = vadd.f32 %v604_v13, %v508_v2 }
 0x12d   :  { %v2707_v29 = vpop.f32.mrf.mxu0  ;;  %v2709_v30 = vpop.f32.mrf.mxu1 }
 0x12e   :  { %v510_v16 = vmul.f32 %v2707_v29, %v2707_v29  ;;  %v569_v46 = vadd.f32 %v568_v25, %v509_v7  ;;  %v468_v49 = vadd.f32 %v467_v28, %v2707_v29 }
 0x12f   :  { %v2711_v32 = vpop.f32.mrf.mxu0  ;;  %v2713_v33 = vpop.f32.mrf.mxu1 }
 0x130   :  { %4136 = vst [vmem:[#allocation18_spill] sm:$0xff] %v2711_v32  ;;  %v511_v34 = vmul.f32 %v2711_v32, %v2711_v32  ;;  %v432_v52 = vadd.f32 %v431_v31, %v2711_v32  ;;  %v606_v60 = vadd.f32 %v605_v37, %v510_v16  ;;  %v2436_v31 = vld [vmem:[#allocation7 + $0x94] ss:$8 sps:$4 sm:$0xff]  }
 0x131   :  { %v2715_v35 = vpop.f32.mrf.mxu0  ;;  %v2717_v36 = vpop.f32.mrf.mxu1  ;;  %1150 = vmatprep.subr.bf16.mxu1 %v2436_v31  ;;  %v2437_v31 = vld [vmem:[#allocation7 + $0x80] ss:$8 sps:$4 sm:$0xff]  }
 0x132   :  { %4137 = vst [vmem:[#allocation19_spill] sm:$0xff] %v2715_v35  ;;  %v512_v40 = vmul.f32 %v2715_v35, %v2715_v35  ;;  %v570_v1 = vadd.f32 %v569_v46, %v511_v34  ;;  %v469_v2 = vadd.f32 %v468_v49, %v2715_v35  ;;  %v2434_v46 = vld [vmem:[#allocation7 + $0x90] ss:$8 sps:$4 sm:$0xff]  }
 0x133   :  { %v2719_v38 = vpop.f32.mrf.mxu0  ;;  %v2721_v39 = vpop.f32.mrf.mxu1  ;;  %1151 = vmatpush2.bf16.msra.mxu1 %v2434_v46 }
 0x134   :  { %4138 = vst [vmem:[#allocation20_spill] sm:$0xff] %v2719_v38  ;;  %v513_v55 = vmul.f32 %v2719_v38, %v2719_v38  ;;  %v433_v4 = vadd.f32 %v432_v52, %v2719_v38  ;;  %v607_v6 = vadd.f32 %v606_v60, %v512_v40 }
 0x135   :  { %v2723_v41 = vpop.f32.mrf.mxu0  ;;  %v2725_v42 = vpop.f32.mrf.mxu1 }
 0x136   :  { %4139 = vst [vmem:[#allocation21_spill] sm:$0xff] %v2723_v41  ;;  %v514_v61 = vmul.f32 %v2723_v41, %v2723_v41  ;;  %v571_v13 = vadd.f32 %v570_v1, %v513_v55  ;;  %v470_v16 = vadd.f32 %v469_v2, %v2723_v41 }
 0x137   :  { %v2727_v44 = vpop.f32.mrf.mxu0  ;;  %v2729_v45 = vpop.f32.mrf.mxu1 }
 0x138   :  { %4140 = vst [vmem:[#allocation22_spill] sm:$0xff] %v2727_v44  ;;  %v515_v5 = vmul.f32 %v2727_v44, %v2727_v44  ;;  %v434_v22 = vadd.f32 %v433_v4, %v2727_v44  ;;  %v608_v34 = vadd.f32 %v607_v6, %v514_v61 }
 0x139   :  { %v2731_v47 = vpop.f32.mrf.mxu0  ;;  %v2733_v48 = vpop.f32.mrf.mxu1 }
 0x13a   :  { %4141 = vst [vmem:[#allocation23_spill] sm:$0xff] %v2731_v47  ;;  %v516_v7 = vmul.f32 %v2731_v47, %v2731_v47  ;;  %v572_v49 = vadd.f32 %v571_v13, %v515_v5  ;;  %v471_v52 = vadd.f32 %v470_v16, %v2731_v47  ;;  %v2439_v13 = vld [vmem:[#allocation7 + $0x84] ss:$8 sps:$4 sm:$0xff]  }
 0x13b   :  { %v2735_v50 = vpop.f32.mrf.mxu0  ;;  %v2737_v51 = vpop.f32.mrf.mxu1  ;;  %1152 = vmatprep.subr.bf16.mxu1 %v2439_v13 }
 0x13c   :  { %4142 = vst [vmem:[#allocation24_spill] sm:$0xff] %v2735_v50  ;;  %v517_v25 = vmul.f32 %v2735_v50, %v2735_v50  ;;  %v435_v55 = vadd.f32 %v434_v22, %v2735_v50  ;;  %v609_v60 = vadd.f32 %v608_v34, %v516_v7  ;;  %1153 = vmatpush2.bf16.msra.mxu1 %v2437_v31 }
 0x13d   :  { %v2739_v53 = vpop.f32.mrf.mxu0  ;;  %v2741_v54 = vpop.f32.mrf.mxu1 }
 0x13e   :  { %4143 = vst [vmem:[#allocation25_spill] sm:$0xff] %v2739_v53  ;;  %v518_v37 = vmul.f32 %v2739_v53, %v2739_v53  ;;  %v573_v1 = vadd.f32 %v572_v49, %v517_v25  ;;  %v472_v2 = vadd.f32 %v471_v52, %v2739_v53 }
 0x13f   :  { %v2747_v58 = vpop.f32.mrf.mxu0  ;;  %v2749_v59 = vpop.f32.mrf.mxu1 }
 0x140   :  { %4144 = vst [vmem:[#allocation26_spill] sm:$0xff] %v2747_v58  ;;  %v519_v57 = vmul.f32 %v2747_v58, %v2747_v58  ;;  %v436_v4 = vadd.f32 %v435_v55, %v2747_v58  ;;  %v610_v16 = vadd.f32 %v609_v60, %v518_v37 }
 0x141   :  { %v2761_v3 = vpop.f32.mrf.mxu0  ;;  %v2768_v8 = vpop.f32.mrf.mxu1 }
 0x142   :  { %4145 = vst [vmem:[#allocation27_spill] sm:$0xff] %v2761_v3  ;;  %v520_v63 = vmul.f32 %v2761_v3, %v2761_v3  ;;  %v574_v34 = vadd.f32 %v573_v1, %v519_v57  ;;  %v473_v25 = vadd.f32 %v472_v2, %v2761_v3 }
 0x143   :  { %v2772_v19 = vpop.f32.mrf.mxu0  ;;  %v2786_v56 = vpop.f32.mrf.mxu1 }
 0x144   :  { %4146 = vst [vmem:[#allocation28_spill] sm:$0xff] %v2772_v19  ;;  %v521_v5 = vmul.f32 %v2772_v19, %v2772_v19  ;;  %v437_v46 = vadd.f32 %v436_v4, %v2772_v19  ;;  %v611_v52 = vadd.f32 %v610_v16, %v520_v63 }
 0x145   :  { %v2780_v43 = vpop.f32.mrf.mxu0  ;;  %v2804_v28 = vpop.f32.mrf.mxu1 }
 0x146   :  { %4147 = vst [vmem:[#allocation29_spill] sm:$0xff] %v2780_v43  ;;  %v522_v7 = vmul.f32 %v2780_v43, %v2780_v43  ;;  %v575_v60 = vadd.f32 %v574_v34, %v521_v5  ;;  %v474_v58 = vadd.f32 %v473_v25, %v2780_v43 }
 0x147   :  { %v2790_v62 = vpop.f32.mrf.mxu0  ;;  %v2822_v6 = vpop.f32.mrf.mxu1 }
 0x148   :  { %4148 = vst [vmem:[#allocation30_spill] sm:$0xff] %v2790_v62  ;;  %v523_v49 = vmul.f32 %v2790_v62, %v2790_v62  ;;  %v438_v57 = vadd.f32 %v437_v46, %v2790_v62  ;;  %v612_v4 = vadd.f32 %v611_v52, %v522_v7 }
 0x149   :  { %v2798_v10 = vpop.f32.mrf.mxu0  ;;  %v2840_v2 = vpop.f32.mrf.mxu1 }
 0x14a   :  { %4149 = vst [vmem:[#allocation31_spill] sm:$0xff] %v2798_v10  ;;  %v524_v55 = vmul.f32 %v2798_v10, %v2798_v10  ;;  %v576_v16 = vadd.f32 %v575_v60, %v523_v49  ;;  %v475_v19 = vadd.f32 %v474_v58, %v2798_v10 }
 0x14b   :  { %v2808_v40 = vpop.f32.mrf.mxu0  ;;  %v2858_v58 = vpop.f32.mrf.mxu1 }
 0x14c   :  { %4150 = vst [vmem:[#allocation32_spill] sm:$0xff] %v2808_v40  ;;  %v525_v1 = vmul.f32 %v2808_v40, %v2808_v40  ;;  %v439_v5 = vadd.f32 %v438_v57, %v2808_v40  ;;  %v613_v34 = vadd.f32 %v612_v4, %v524_v55 }
 0x14d   :  { %v2816_v61 = vpop.f32.mrf.mxu0  ;;  %v2874_v10 = vpop.f32.mrf.mxu1 }
 0x14e   :  { %4151 = vst [vmem:[#allocation33_spill] sm:$0xff] %v2816_v61  ;;  %v526_v63 = vmul.f32 %v2816_v61, %v2816_v61  ;;  %v577_v7 = vadd.f32 %v576_v16, %v525_v1  ;;  %v476_v52 = vadd.f32 %v475_v19, %v2816_v61 }
 0x14f   :  { %v2826_v22 = vpop.f32.mrf.mxu0 }
 0x150   :  { %4152 = vst [vmem:[#allocation34_spill] sm:$0xff] %v2826_v22  ;;  %v527_v31 = vmul.f32 %v2826_v22, %v2826_v22  ;;  %v440_v62 = vadd.f32 %v439_v5, %v2826_v22  ;;  %v614_v60 = vadd.f32 %v613_v34, %v526_v63 }
 0x151   :  { %v2834_v37 = vpop.f32.mrf.mxu0 }
 0x152   :  { %4153 = vst [vmem:[#allocation35_spill] sm:$0xff] %v2834_v37  ;;  %v528_v25 = vmul.f32 %v2834_v37, %v2834_v37  ;;  %v578_v4 = vadd.f32 %v577_v7, %v527_v31  ;;  %v477_v40 = vadd.f32 %v476_v52, %v2834_v37 }
 0x153   :  { %v2844_v13 = vpop.f32.mrf.mxu0 }
 0x154   :  { %4154 = vst [vmem:[#allocation36_spill] sm:$0xff] %v2844_v13  ;;  %v529_v49 = vmul.f32 %v2844_v13, %v2844_v13  ;;  %v441_v1 = vadd.f32 %v440_v62, %v2844_v13  ;;  %v615_v16 = vadd.f32 %v614_v60, %v528_v25 }
 0x155   :  { %v2852_v46 = vpop.f32.mrf.mxu0 }
 0x156   :  { %4155 = vst [vmem:[#allocation37_spill] sm:$0xff] %v2852_v46  ;;  %v530_v57 = vmul.f32 %v2852_v46, %v2852_v46  ;;  %v579_v22 = vadd.f32 %v578_v4, %v529_v49  ;;  %v478_v61 = vadd.f32 %v477_v40, %v2852_v46  ;;  %v535_v40 = vmul.f32 %v2681_v9, %v2681_v9 }
 0x157   :  { %v2862_v55 = vpop.f32.mrf.mxu0 }
 0x158   :  { %4156 = vst [vmem:[#allocation38_spill] sm:$0xff] %v2862_v55  ;;  %v531_v19 = vmul.f32 %v2862_v55, %v2862_v55  ;;  %v442_v63 = vadd.f32 %v441_v1, %v2862_v55  ;;  %v616_v31 = vadd.f32 %v615_v16, %v530_v57  ;;  %v537_v16 = vmul.f32 %v2689_v15, %v2689_v15 }
 0x159   :  { %v2868_v5 = vpop.f32.mrf.mxu0 }
 0x15a   :  { %4157 = vst [vmem:[#allocation39_spill] sm:$0xff] %v2868_v5  ;;  %v532_v34 = vmul.f32 %v2868_v5, %v2868_v5  ;;  %v580_v62 = vadd.f32 %v579_v22, %v531_v19  ;;  %v479_v52 = vadd.f32 %v478_v61, %v2868_v5  ;;  %v2890_v61 = vpop.f32.mrf.mxu1  ;;  %v536_v19 = vmul.f32 %v2685_v12, %v2685_v12 }
 0x15b   :  { %v2876_v7 = vpop.f32.mrf.mxu0 }
 0x15c   :  { %4158 = vst [vmem:[#allocation40_spill] sm:$0xff] %v2876_v7  ;;  %v443_v25 = vadd.f32 %v442_v63, %v2876_v7  ;;  %v533_v49 = vmul.f32 %v2876_v7, %v2876_v7  ;;  %v617_v60 = vadd.f32 %v616_v31, %v532_v34  ;;  %v2904_v13 = vpop.f32.mrf.mxu1 }
 0x15d   :  { %v2884_v4 = vpop.f32.mrf.mxu0 }
 0x15e   :  { %4159 = vst [vmem:[#allocation41_spill] sm:$0xff] %v2884_v4  ;;  %v444_v1 = vadd.f32 %v443_v25, %v2681_v9  ;;  %v581_v55 = vadd.f32 %v580_v62, %v533_v49  ;;  %v480_v57 = vadd.f32 %v479_v52, %v2884_v4  ;;  %v534_v22 = vmul.f32 %v2884_v4, %v2884_v4 }
 0x15f   :  { %v538_v62 = vmul.f32 %v2693_v18, %v2693_v18  ;;  %v539_v52 = vmul.f32 %v2697_v21, %v2697_v21 }
 0x160   :  { %v445_v63 = vadd.f32 %v444_v1, %v2689_v15  ;;  %v582_v34 = vadd.f32 %v581_v55, %v535_v40  ;;  %v481_v31 = vadd.f32 %v480_v57, %v2685_v12  ;;  %v618_v25 = vadd.f32 %v617_v60, %v534_v22 }
 0x161   :  { %v540_v55 = vmul.f32 %v2701_v24, %v2701_v24  ;;  %v541_v40 = vmul.f32 %v2705_v27, %v2705_v27 }
 0x162   :  { %v446_v49 = vadd.f32 %v445_v63, %v2697_v21  ;;  %v583_v7 = vadd.f32 %v582_v34, %v537_v16  ;;  %v482_v4 = vadd.f32 %v481_v31, %v2693_v18  ;;  %v619_v5 = vadd.f32 %v618_v25, %v536_v19  ;;  %v2918_v18 = vpop.f32.mrf.mxu1 }
 0x163   :  { %v542_v16 = vmul.f32 %v2709_v30, %v2709_v30  ;;  %v543_v19 = vmul.f32 %v2713_v33, %v2713_v33 }
 0x164   :  { %v447_v60 = vadd.f32 %v446_v49, %v2705_v27  ;;  %v584_v1 = vadd.f32 %v583_v7, %v539_v52  ;;  %v483_v57 = vadd.f32 %v482_v4, %v2701_v24  ;;  %v620_v22 = vadd.f32 %v619_v5, %v538_v62  ;;  %v2932_v12 = vpop.f32.mrf.mxu1 }
 0x165   :  { %v544_v7 = vmul.f32 %v2717_v36, %v2717_v36  ;;  %v545_v5 = vmul.f32 %v2721_v39, %v2721_v39 }
 0x166   :  { %v585_v63 = vadd.f32 %v584_v1, %v541_v40  ;;  %v484_v34 = vadd.f32 %v483_v57, %v2709_v30  ;;  %v621_v31 = vadd.f32 %v620_v22, %v540_v55  ;;  %v448_v25 = vadd.f32 %v447_v60, %v2713_v33  ;;  %v2946_v46 = vpop.f32.mrf.mxu1 }
 0x167   :  { %v546_v40 = vmul.f32 %v2725_v42, %v2725_v42  ;;  %v547_v55 = vmul.f32 %v2729_v45, %v2729_v45 }
 0x168   :  { %v622_v4 = vadd.f32 %v621_v31, %v542_v16  ;;  %v449_v62 = vadd.f32 %v448_v25, %v2721_v39  ;;  %v586_v52 = vadd.f32 %v585_v63, %v543_v19  ;;  %v485_v49 = vadd.f32 %v484_v34, %v2717_v36  ;;  %v2960_v37 = vpop.f32.mrf.mxu1 }
 0x169   :  { %v548_v16 = vmul.f32 %v2733_v48, %v2733_v48  ;;  %v549_v19 = vmul.f32 %v2737_v51, %v2737_v51 }
 0x16a   :  { %v450_v60 = vadd.f32 %v449_v62, %v2729_v45  ;;  %v587_v1 = vadd.f32 %v586_v52, %v545_v5  ;;  %v486_v57 = vadd.f32 %v485_v49, %v2725_v42  ;;  %v623_v22 = vadd.f32 %v622_v4, %v544_v7  ;;  %v2974_v43 = vpop.f32.mrf.mxu1 }
 0x16b   :  { %v550_v5 = vmul.f32 %v2741_v54, %v2741_v54  ;;  %v551_v7 = vmul.f32 %v2749_v59, %v2749_v59  ;;  %4160 = vst [vmem:[#allocation42_spill] sm:$0xff] %v2974_v43 }
 0x16c   :  { %v451_v63 = vadd.f32 %v450_v60, %v2737_v51  ;;  %v588_v34 = vadd.f32 %v587_v1, %v547_v55  ;;  %v487_v31 = vadd.f32 %v486_v57, %v2733_v48  ;;  %v624_v25 = vadd.f32 %v623_v22, %v546_v40  ;;  %v2988_v3 = vpop.f32.mrf.mxu1 }
 0x16d   :  { %v552_v55 = vmul.f32 %v2768_v8, %v2768_v8  ;;  %v553_v40 = vmul.f32 %v2786_v56, %v2786_v56 }
 0x16e   :  { %v452_v4 = vadd.f32 %v451_v63, %v2749_v59  ;;  %v589_v62 = vadd.f32 %v588_v34, %v549_v19  ;;  %v488_v52 = vadd.f32 %v487_v31, %v2741_v54  ;;  %v625_v49 = vadd.f32 %v624_v25, %v548_v16 }
 0x16f   :  { %v554_v19 = vmul.f32 %v2804_v28, %v2804_v28  ;;  %v555_v16 = vmul.f32 %v2822_v6, %v2822_v6 }
 0x170   :  { %v453_v60 = vadd.f32 %v452_v4, %v2786_v56  ;;  %v590_v1 = vadd.f32 %v589_v62, %v551_v7  ;;  %v489_v57 = vadd.f32 %v488_v52, %v2768_v8  ;;  %v626_v22 = vadd.f32 %v625_v49, %v550_v5 }
 0x171   :  { %v556_v7 = vmul.f32 %v2840_v2, %v2840_v2  ;;  %v557_v5 = vmul.f32 %v2858_v58, %v2858_v58 }
 0x172   :  { %v591_v63 = vadd.f32 %v590_v1, %v553_v40  ;;  %v490_v34 = vadd.f32 %v489_v57, %v2804_v28  ;;  %v627_v31 = vadd.f32 %v626_v22, %v552_v55  ;;  %v454_v25 = vadd.f32 %v453_v60, %v2822_v6 }
 0x173   :  { %v558_v40 = vmul.f32 %v2874_v10, %v2874_v10  ;;  %v559_v55 = vmul.f32 %v2890_v61, %v2890_v61 }
 0x174   :  { %v628_v4 = vadd.f32 %v627_v31, %v554_v19  ;;  %v592_v62 = vadd.f32 %v591_v63, %v555_v16  ;;  %v491_v52 = vadd.f32 %v490_v34, %v2840_v2  ;;  %v455_v49 = vadd.f32 %v454_v25, %v2858_v58 }
 0x175   :  { %v560_v19 = vmul.f32 %v2904_v13, %v2904_v13  ;;  %v561_v16 = vmul.f32 %v2918_v18, %v2918_v18 }
 0x176   :  { %v629_v60 = vadd.f32 %v628_v4, %v556_v7  ;;  %v593_v1 = vadd.f32 %v592_v62, %v557_v5  ;;  %v492_v57 = vadd.f32 %v491_v52, %v2874_v10  ;;  %v456_v22 = vadd.f32 %v455_v49, %v2890_v61 }
 0x177   :  { %v562_v7 = vmul.f32 %v2932_v12, %v2932_v12  ;;  %v563_v5 = vmul.f32 %v2946_v46, %v2946_v46 }
 0x178   :  { %v630_v63 = vadd.f32 %v629_v60, %v558_v40  ;;  %v594_v34 = vadd.f32 %v593_v1, %v559_v55  ;;  %v493_v31 = vadd.f32 %v492_v57, %v2904_v13  ;;  %v457_v25 = vadd.f32 %v456_v22, %v2918_v18 }
 0x179   :  { %v564_v40 = vmul.f32 %v2960_v37, %v2960_v37  ;;  %v565_v55 = vmul.f32 %v2974_v43, %v2974_v43 }
 0x17a   :  { %v631_v4 = vadd.f32 %v630_v63, %v560_v19  ;;  %v595_v62 = vadd.f32 %v594_v34, %v561_v16  ;;  %v494_v52 = vadd.f32 %v493_v31, %v2932_v12  ;;  %v458_v49 = vadd.f32 %v457_v25, %v2946_v46 }
 0x17b   :  { %v566_v19 = vmul.f32 %v2988_v3, %v2988_v3 }
 0x17c   :  { %v632_v60 = vadd.f32 %v631_v4, %v562_v7  ;;  %v596_v1 = vadd.f32 %v595_v62, %v563_v5  ;;  %v495_v57 = vadd.f32 %v494_v52, %v2960_v37  ;;  %v459_v22 = vadd.f32 %v458_v49, %v2974_v43 }
 0x17e   :  { %v633_v16 = vadd.f32 %v632_v60, %v564_v40  ;;  %v460_v63 = vrot.slane %v459_v22, 4  ;;  %v597_v34 = vadd.f32 %v596_v1, %v565_v55  ;;  %v496_v31 = vadd.f32 %v495_v57, %v2988_v3 }
 0x180   :  { %v461_v25 = vadd.f32 %v460_v63, %v459_v22  ;;  %v598_v50 = vrot.slane %v597_v34, 4  ;;  %v497_v44 = vrot.slane %v496_v31, 4  ;;  %v634_v53 = vadd.f32 %v633_v16, %v566_v19 }
 0x182   :  { %v462_v47 = vrot.slane %v461_v25, 2  ;;  %v599_v41 = vadd.f32 %v598_v50, %v597_v34  ;;  %v498_v7 = vadd.f32 %v497_v44, %v496_v31  ;;  %v635_v5 = vrot.slane %v634_v53, 4 }
 0x184   :  { %v463_v4 = vadd.f32 %v462_v47, %v461_v25  ;;  %v600_v62 = vrot.slane %v599_v41, 2  ;;  %v499_v52 = vrot.slane %v498_v7, 2  ;;  %v636_v49 = vadd.f32 %v635_v5, %v634_v53 }
 0x186   :  { %v464_v38 = vrot.slane %v463_v4, 1  ;;  %v601_v35 = vadd.f32 %v600_v62, %v599_v41  ;;  %v500_v32 = vadd.f32 %v499_v52, %v498_v7  ;;  %v637_v40 = vrot.slane %v636_v49, 2  ;;  %v91_v52 = vld [vmem:[#allocation10] sm:$0xff] }
 0x188   :  { %v465_v60 = vadd.f32 %v464_v38, %v463_v4  ;;  %v602_v55 = vrot.slane %v601_v35, 1  ;;  %v501_v1 = vrot.slane %v500_v32, 1  ;;  %v638_v57 = vadd.f32 %v637_v40, %v636_v49 }
 0x189   :  { %v661_v38 = vlaneseq }
 0x18a   :  { %v603_v22 = vadd.f32 %v602_v55, %v601_v35  ;;  %v641_v63 = vmul.f32 0.00390625, %v465_v60  ;;  %v502_v43 = vadd.f32 %v501_v1, %v500_v32  ;;  %v639_v19 = vrot.slane %v638_v57, 1 }
 0x18b   :  { %v2999_v4 = vshrl.u32 %v661_v38, 7 }
 0x18c   :  { %v643_v16 = vmul.f32 0.00390625, %v603_v22  ;;  %v645_v50 = vmul.f32 %v641_v63, %v641_v63  ;;  %v640_v44 = vadd.f32 %v639_v19, %v638_v57  ;;  %v642_v34 = vmul.f32 0.00390625, %v502_v43 }
 0x18d   :  { %v663_v40 = vsub.s32 0, %v2999_v4  ;;  %v667_v43 = vsub.s32 4, %v2999_v4 }
 0x18e   :  { %v647_v47 = vsub.f32 %v643_v16, %v645_v50  ;;  %v644_v31 = vmul.f32 0.00390625, %v640_v44  ;;  %v646_v25 = vmul.f32 %v642_v34, %v642_v34  ;;  %v758_v50 = vsub.s32 5, %v2999_v4 }
 0x190   :  { %v649_v53 = vmax.f32 %v647_v47, 0.0  ;;  %v648_v5 = vsub.f32 %v644_v31, %v646_v25  ;;  %v754_v31 = vsub.s32 1, %v2999_v4 }
 0x192   :  { %v651_v41 = vadd.f32 1e-05, %v649_v53  ;;  %v650_v7 = vmax.f32 %v648_v5, 0.0 }
 0x194   :  { %v652_v62 = vadd.f32 1e-05, %v650_v7  ;;  %2456 = vrsqrt.f32 %v651_v41 }
 0x196   :  { %2458 = vrsqrt.f32 %v652_v62 }
 0x1a1   :  { %v2457_v35 = vpop.eup %2456 }
 0x1a3   :  { %v2459_v32 = vpop.eup %2458 }
 0x1a4   :  { %v657_v49 = vcombine.low %v2457_v35, %v2459_v32 }
 0x1a6   :  { %v659_v60 = vmul.f32 %v657_v49, %v91_v52 }
 0x1a8   :  { %v664_v55 = vrot.slane %v659_v60, %v663_v40  ;;  %v668_v1 = vrot.slane %v659_v60, %v667_v43 }
 0x1aa   :  { %v671_v57 = vmul.f32 %v664_v55, %v641_v63  ;;  %v672_v22 = vmul.f32 %v668_v1, %v642_v34  ;;  %v3004_v47 = vrot.slane %v668_v1, %v663_v40  ;;  %v3014_v63 = vrot.slane %v664_v55, %v663_v40  ;;  %v4161_v40 = vld [vmem:[#allocation42_spill] sm:$0xff] }
 0x1ac   :  { %v675_v19 = vcombine.low %v671_v57, %v672_v22  ;;  %v750_v53 = vmul.f32 %v3004_v47, %v2988_v3  ;;  %v687_v7 = vmul.f32 %v3014_v63, %v2679_v0  ;;  %v688_v62 = vmul.f32 %v3004_v47, %v2683_v11 }
 0x1ad   :  { %v689_v38 = vmul.f32 %v3014_v63, %v2687_v14  ;;  %v690_v3 = vmul.f32 %v3004_v47, %v2691_v17  ;;  %v3026_v35 = vmul.f32 %v3014_v63, %v2695_v20  ;;  %v692_v32 = vmul.f32 %v3004_v47, %v2699_v23 }
 0x1ae   :  { %v676_v16 = vrot.slane %v675_v19, 7  ;;  %v3034_v0 = vmul.f32 %v3014_v63, %v2703_v26  ;;  %v694_v11 = vmul.f32 %v3004_v47, %v2707_v29  ;;  %v719_v14 = vmul.f32 %v3014_v63, %v2681_v9 }
 0x1af   :  { %v721_v17 = vmul.f32 %v3014_v63, %v2689_v15  ;;  %v723_v20 = vmul.f32 %v3014_v63, %v2697_v21  ;;  %v724_v23 = vmul.f32 %v3004_v47, %v2701_v24  ;;  %v725_v49 = vmul.f32 %v3014_v63, %v2705_v27 }
 0x1b0   :  { %v678_v44 = vsub.f32 %v91_v52, %v676_v16  ;;  %v726_v26 = vmul.f32 %v3004_v47, %v2709_v30  ;;  %v727_v29 = vmul.f32 %v3014_v63, %v2713_v33  ;;  %v728_v9 = vmul.f32 %v3004_v47, %v2717_v36 }
 0x1b1   :  { %v729_v15 = vmul.f32 %v3014_v63, %v2721_v39  ;;  %v730_v21 = vmul.f32 %v3004_v47, %v2725_v42  ;;  %v731_v24 = vmul.f32 %v3014_v63, %v2729_v45  ;;  %v732_v27 = vmul.f32 %v3004_v47, %v2733_v48 }
 0x1b2   :  { %v759_v25 = vrot.slane %v678_v44, %v758_v50  ;;  %v755_v34 = vrot.slane %v678_v44, %v754_v31  ;;  %v733_v30 = vmul.f32 %v3014_v63, %v2737_v51  ;;  %v734_v33 = vmul.f32 %v3004_v47, %v2741_v54 }
 0x1b3   :  { %v735_v36 = vmul.f32 %v3014_v63, %v2749_v59  ;;  %v736_v39 = vmul.f32 %v3004_v47, %v2768_v8  ;;  %v737_v42 = vmul.f32 %v3014_v63, %v2786_v56  ;;  %v738_v45 = vmul.f32 %v3004_v47, %v2804_v28 }
 0x1b4   :  { %v3009_v5 = vrot.slane %v759_v25, %v754_v31  ;;  %v3030_v52 = vrot.slane %v755_v34, %v754_v31  ;;  %v739_v48 = vmul.f32 %v3014_v63, %v2822_v6  ;;  %v740_v51 = vmul.f32 %v3004_v47, %v2840_v2 }
 0x1b5   :  { %v741_v54 = vmul.f32 %v3014_v63, %v2858_v58  ;;  %v742_v59 = vmul.f32 %v3004_v47, %v2874_v10  ;;  %v743_v8 = vmul.f32 %v3014_v63, %v2890_v61  ;;  %v744_v56 = vmul.f32 %v3004_v47, %v2904_v13 }
 0x1b6   :  { %v3012_v41 = vadd.f32 %v3009_v5, %v750_v53  ;;  %v745_v28 = vmul.f32 %v3014_v63, %v2918_v18  ;;  %v746_v6 = vmul.f32 %v3004_v47, %v2932_v12  ;;  %v747_v2 = vmul.f32 %v3014_v63, %v2946_v46 }
 0x1b7   :  { %v748_v58 = vmul.f32 %v3004_v47, %v2960_v37  ;;  %v749_v10 = vmul.f32 %v3014_v63, %v4161_v40  ;;  %v770_v61 = vadd.f32 %v3030_v52, %v687_v7  ;;  %v771_v43 = vadd.f32 %v3009_v5, %v688_v62 }
 0x1b8   :  { %v772_v13 = vadd.f32 %v3030_v52, %v689_v38  ;;  %v773_v18 = vadd.f32 %v3009_v5, %v690_v3  ;;  %v775_v60 = vadd.f32 %v3009_v5, %v692_v32  ;;  %v777_v12 = vadd.f32 %v3009_v5, %v694_v11 }
 0x1b9   :  { %v3103_v46 = vadd.f32 %v3030_v52, %v719_v14  ;;  %v3106_v37 = vadd.f32 %v3030_v52, %v721_v17  ;;  %v3109_v55 = vadd.f32 %v3030_v52, %v723_v20  ;;  %v3112_v1 = vadd.f32 %v3009_v5, %v724_v23 }
 0x1ba   :  { %v3115_v57 = vadd.f32 %v3030_v52, %v725_v49  ;;  %v3118_v22 = vadd.f32 %v3009_v5, %v726_v26  ;;  %v3121_v19 = vadd.f32 %v3030_v52, %v727_v29  ;;  %v3124_v16 = vadd.f32 %v3009_v5, %v728_v9 }
 0x1bb   :  { %v3127_v50 = vadd.f32 %v3030_v52, %v729_v15  ;;  %v3130_v44 = vadd.f32 %v3009_v5, %v730_v21  ;;  %v3133_v31 = vadd.f32 %v3030_v52, %v731_v24  ;;  %v3136_v25 = vadd.f32 %v3009_v5, %v732_v27 }
 0x1bc   :  { %v3139_v53 = vadd.f32 %v3030_v52, %v733_v30  ;;  %v3142_v34 = vadd.f32 %v3009_v5, %v734_v33  ;;  %v3145_v7 = vadd.f32 %v3030_v52, %v735_v36  ;;  %v3148_v62 = vadd.f32 %v3009_v5, %v736_v39  ;;  %v4162_v36 = vld [vmem:[#allocation18_spill] sm:$0xff] }
 0x1bd   :  { %v3151_v38 = vadd.f32 %v3030_v52, %v737_v42  ;;  %v3154_v3 = vadd.f32 %v3009_v5, %v738_v45  ;;  %v3157_v32 = vadd.f32 %v3030_v52, %v739_v48  ;;  %v3160_v11 = vadd.f32 %v3009_v5, %v740_v51  ;;  %v4163_v42 = vld [vmem:[#allocation19_spill] sm:$0xff]  ;;  %v4164_v48 = vld [vmem:[#allocation20_spill] sm:$0xff] }
 0x1be   :  { %v3163_v14 = vadd.f32 %v3030_v52, %v741_v54  ;;  %v3166_v17 = vadd.f32 %v3009_v5, %v742_v59  ;;  %v3169_v20 = vadd.f32 %v3030_v52, %v743_v8  ;;  %v3172_v23 = vadd.f32 %v3009_v5, %v744_v56  ;;  %v4165_v59 = vld [vmem:[#allocation21_spill] sm:$0xff]  ;;  %v4166_v56 = vld [vmem:[#allocation23_spill] sm:$0xff] }
 0x1bf   :  { %v3175_v49 = vadd.f32 %v3030_v52, %v745_v28  ;;  %v3178_v26 = vadd.f32 %v3009_v5, %v746_v6  ;;  %v3181_v29 = vadd.f32 %v3030_v52, %v747_v2  ;;  %v3184_v9 = vadd.f32 %v3009_v5, %v748_v58  ;;  %v4167_v58 = vld [vmem:[#allocation25_spill] sm:$0xff] }
 0x1c0   :  { %v3187_v15 = vadd.f32 %v3030_v52, %v749_v10  ;;  %v834_v21 = vmax.f32 %v770_v61, 0.0  ;;  %v836_v24 = vmax.f32 %v772_v13, 0.0  ;;  %v835_v27 = vmax.f32 %v771_v43, 0.0 }
 0x1c1   :  { %v837_v30 = vmax.f32 %v773_v18, 0.0  ;;  %v839_v33 = vmax.f32 %v775_v60, 0.0  ;;  %v695_v39 = vmul.f32 %v3014_v63, %v4162_v36  ;;  %v696_v45 = vmul.f32 %v3004_v47, %v4163_v42 }
 0x1c2   :  { %v697_v51 = vmul.f32 %v3014_v63, %v4164_v48  ;;  %v841_v54 = vmax.f32 %v777_v12, 0.0  ;;  %v698_v8 = vmul.f32 %v3004_v47, %v4165_v59  ;;  %v700_v28 = vmul.f32 %v3004_v47, %v4166_v56  ;;  %v4170_v59 = vld [vmem:[#allocation27_spill] sm:$0xff] }
 0x1c3   :  { %v898_v6 = vpack.c.bf16 %v836_v24, %v834_v21  ;;  %v899_v2 = vpack.c.bf16 %v837_v30, %v835_v27  ;;  %v702_v40 = vmul.f32 %v3004_v47, %v4167_v58  ;;  %v774_v10 = vadd.f32 %v3030_v52, %v3026_v35  ;;  %v4168_v35 = vld [vmem:[#allocation22_spill] sm:$0xff] }
 0x1c4   :  { %v776_v61 = vadd.f32 %v3030_v52, %v3034_v0  ;;  %v778_v43 = vadd.f32 %v3030_v52, %v695_v39  ;;  %v779_v13 = vadd.f32 %v3009_v5, %v696_v45  ;;  %v780_v18 = vadd.f32 %v3030_v52, %v697_v51  ;;  %v4169_v0 = vld [vmem:[#allocation24_spill] sm:$0xff] }
 0x1c5   :  { %v781_v60 = vadd.f32 %v3009_v5, %v698_v8  ;;  %1154 = vmatprep.mubr.bf16.mxu1 %v899_v2  ;;  %v901_v12 = vpack.c.bf16 %v841_v54, %v839_v33  ;;  %v783_v21 = vadd.f32 %v3009_v5, %v700_v28  ;;  %v785_v24 = vadd.f32 %v3009_v5, %v702_v40  ;;  %v4171_v54 = vld [vmem:[#allocation29_spill] sm:$0xff] }
 0x1c6   :  { %1155 = vmatmul.mubr.bf16.vlgmr.msra.gmra.mxu1 %v898_v6  ;;  %v699_v27 = vmul.f32 %v3014_v63, %v4168_v35  ;;  %v701_v30 = vmul.f32 %v3014_v63, %v4169_v0  ;;  %v838_v36 = vmax.f32 %v774_v10, 0.0  ;;  %v840_v39 = vmax.f32 %v776_v61, 0.0 }
 0x1c7   :  { %1164 = vmatprep.mubr.bf16.mxu1 %v901_v12  ;;  %v843_v42 = vmax.f32 %v779_v13, 0.0  ;;  %v845_v45 = vmax.f32 %v781_v60, 0.0  ;;  %v842_v48 = vmax.f32 %v778_v43, 0.0  ;;  %v844_v51 = vmax.f32 %v780_v18, 0.0 }
 0x1c8   :  { %v704_v33 = vmul.f32 %v3004_v47, %v4170_v59  ;;  %v706_v8 = vmul.f32 %v3004_v47, %v4171_v54  ;;  %v847_v56 = vmax.f32 %v783_v21, 0.0  ;;  %v849_v28 = vmax.f32 %v785_v24, 0.0 }
 0x1c9   :  { %v3220_v6 = vadd.f32 %v3030_v52, %v699_v27  ;;  %v3223_v2 = vadd.f32 %v3030_v52, %v701_v30  ;;  %v900_v10 = vpack.c.bf16 %v840_v39, %v838_v36  ;;  %v866_v61 = vmax.f32 %v3103_v46, 0.0 }
 0x1ca   :  { %v3226_v58 = vadd.f32 %v3009_v5, %v704_v33  ;;  %v3229_v40 = vadd.f32 %v3009_v5, %v706_v8  ;;  %v903_v43 = vpack.c.bf16 %v845_v45, %v843_v42  ;;  %v902_v13 = vpack.c.bf16 %v844_v51, %v842_v48 }
 0x1cb   :  { %v868_v18 = vmax.f32 %v3106_v37, 0.0  ;;  %v871_v60 = vmax.f32 %v3112_v1, 0.0  ;;  %v905_v12 = vpack.c.bf16 %v849_v28, %v847_v56  ;;  %v873_v21 = vmax.f32 %v3118_v22, 0.0 }
 0x1cc   :  { %v870_v24 = vmax.f32 %v3109_v55, 0.0  ;;  %v872_v35 = vmax.f32 %v3115_v57, 0.0  ;;  %v875_v0 = vmax.f32 %v3124_v16, 0.0  ;;  %v877_v46 = vmax.f32 %v3130_v44, 0.0 }
 0x1cd   :  { %v3237_v27 = vpack.c.bf16 %v868_v18, %v866_v61  ;;  %v874_v30 = vmax.f32 %v3121_v19, 0.0  ;;  %v3242_v37 = vpack.c.bf16 %v873_v21, %v871_v60  ;;  %v876_v36 = vmax.f32 %v3127_v50, 0.0  ;;  %v4172_v61 = vld [vmem:[#allocation26_spill] sm:$0xff] }
 0x1ce   :  { %1165 = vmatmul.mubr.bf16.gmra.mxu1 %v900_v10  ;;  %v3244_v1 = vpack.c.bf16 %v872_v35, %v870_v24  ;;  %v879_v22 = vmax.f32 %v3136_v25, 0.0  ;;  %v3248_v55 = vpack.c.bf16 %v877_v46, %v875_v0  ;;  %v881_v57 = vmax.f32 %v3142_v34, 0.0 }
 0x1cf   :  { %1174 = vmatprep.mubr.bf16.mxu1 %v903_v43  ;;  %v878_v39 = vmax.f32 %v3133_v31, 0.0  ;;  %v880_v16 = vmax.f32 %v3139_v53, 0.0  ;;  %v3253_v42 = vpack.c.bf16 %v876_v36, %v874_v30  ;;  %v883_v19 = vmax.f32 %v3148_v62, 0.0  ;;  %v4174_v43 = vld [vmem:[#allocation31_spill] sm:$0xff]  ;;  %v4176_v30 = vld [vmem:[#allocation30_spill] sm:$0xff] }
 0x1d0   :  { %v885_v44 = vmax.f32 %v3154_v3, 0.0  ;;  %v882_v45 = vmax.f32 %v3145_v7, 0.0  ;;  %v3258_v48 = vpack.c.bf16 %v881_v57, %v879_v22  ;;  %v884_v25 = vmax.f32 %v3151_v38, 0.0  ;;  %v4177_v22 = vld [vmem:[#allocation32_spill] sm:$0xff] }
 0x1d1   :  { %v3260_v50 = vpack.c.bf16 %v880_v16, %v878_v39  ;;  %v887_v34 = vmax.f32 %v3160_v11, 0.0  ;;  %v889_v31 = vmax.f32 %v3166_v17, 0.0  ;;  %v886_v53 = vmax.f32 %v3157_v32, 0.0  ;;  %v4178_v39 = vld [vmem:[#allocation35_spill] sm:$0xff] }
 0x1d2   :  { %v3264_v51 = vpack.c.bf16 %v885_v44, %v883_v19  ;;  %v888_v62 = vmax.f32 %v3163_v14, 0.0  ;;  %v3269_v59 = vpack.c.bf16 %v884_v25, %v882_v45  ;;  %v891_v7 = vmax.f32 %v3172_v23, 0.0  ;;  %v4179_v19 = vld [vmem:[#allocation37_spill] sm:$0xff] }
 0x1d3   :  { %v893_v3 = vmax.f32 %v3178_v26, 0.0  ;;  %v890_v33 = vmax.f32 %v3169_v20, 0.0  ;;  %v3274_v38 = vpack.c.bf16 %v889_v31, %v887_v34  ;;  %v892_v54 = vmax.f32 %v3175_v49, 0.0 }
 0x1d4   :  { %v3276_v11 = vpack.c.bf16 %v888_v62, %v886_v53  ;;  %v895_v17 = vmax.f32 %v3184_v9, 0.0  ;;  %v897_v14 = vmax.f32 %v3012_v41, 0.0  ;;  %v894_v23 = vmax.f32 %v3181_v29, 0.0  ;;  %v4173_v29 = vld [vmem:[#allocation28_spill] sm:$0xff] }
 0x1d5   :  { %v3280_v32 = vpack.c.bf16 %v893_v3, %v891_v7  ;;  %v896_v26 = vmax.f32 %v3187_v15, 0.0  ;;  %v846_v20 = vmax.f32 %v3220_v6, 0.0  ;;  %v848_v8 = vmax.f32 %v3223_v2, 0.0  ;;  %v4175_v2 = vld [vmem:[#allocation33_spill] sm:$0xff] }
 0x1d6   :  { %1175 = vmatmul.mubr.bf16.gmra.mxu1 %v902_v13  ;;  %v3287_v56 = vpack.c.bf16 %v892_v54, %v890_v33  ;;  %v851_v28 = vmax.f32 %v3226_v58, 0.0  ;;  %v853_v49 = vmax.f32 %v3229_v40, 0.0  ;;  %v3291_v9 = vpack.c.bf16 %v897_v14, %v895_v17  ;;  %v4180_v17 = vld [vmem:[#allocation34_spill] sm:$0xff] }
 0x1d7   :  { %1184 = vmatprep.mubr.bf16.mxu1 %v905_v12  ;;  %v3293_v10 = vpack.c.bf16 %v896_v26, %v894_v23  ;;  %v703_v41 = vmul.f32 %v3014_v63, %v4172_v61  ;;  %v705_v15 = vmul.f32 %v3014_v63, %v4173_v29  ;;  %v708_v6 = vmul.f32 %v3004_v47, %v4174_v43  ;;  %v4181_v23 = vld [vmem:[#allocation36_spill] sm:$0xff] }
 0x1d8   :  { %v710_v13 = vmul.f32 %v3004_v47, %v4175_v2  ;;  %v904_v18 = vpack.c.bf16 %v848_v8, %v846_v20  ;;  %v907_v21 = vpack.c.bf16 %v853_v49, %v851_v28  ;;  %v707_v36 = vmul.f32 %v3014_v63, %v4176_v30  ;;  %v4182_v20 = vld [vmem:[#allocation39_spill] sm:$0xff]  ;;  %v4183_v28 = vld [vmem:[#allocation41_spill] sm:$0xff] }
 0x1d9   :  { %v786_v58 = vadd.f32 %v3030_v52, %v703_v41  ;;  %v788_v40 = vadd.f32 %v3030_v52, %v705_v15  ;;  %v791_v60 = vadd.f32 %v3009_v5, %v708_v6  ;;  %v709_v57 = vmul.f32 %v3014_v63, %v4177_v22 }
 0x1da   :  { %v793_v12 = vadd.f32 %v3009_v5, %v710_v13  ;;  %v712_v16 = vmul.f32 %v3004_v47, %v4178_v39  ;;  %v714_v44 = vmul.f32 %v3004_v47, %v4179_v19  ;;  %v790_v45 = vadd.f32 %v3030_v52, %v707_v36 }
 0x1db   :  { %v850_v24 = vmax.f32 %v786_v58, 0.0  ;;  %v852_v35 = vmax.f32 %v788_v40, 0.0  ;;  %v855_v0 = vmax.f32 %v791_v60, 0.0  ;;  %v792_v25 = vadd.f32 %v3030_v52, %v709_v57 }
 0x1dc   :  { %v857_v46 = vmax.f32 %v793_v12, 0.0  ;;  %v795_v31 = vadd.f32 %v3009_v5, %v712_v16  ;;  %v797_v53 = vadd.f32 %v3009_v5, %v714_v44  ;;  %v854_v7 = vmax.f32 %v790_v45, 0.0  ;;  %v4185_v12 = vld [vmem:[#allocation40_spill] sm:$0xff] }
 0x1dd   :  { %v906_v34 = vpack.c.bf16 %v852_v35, %v850_v24  ;;  %v856_v3 = vmax.f32 %v792_v25, 0.0  ;;  %v711_v14 = vmul.f32 %v3014_v63, %v4180_v17  ;;  %v713_v26 = vmul.f32 %v3014_v63, %v4181_v23  ;;  %v4186_v24 = vld [vmem:[#allocation16_spill] sm:$0xff]  ;;  %v2440_v23 = vld [vmem:[#allocation8 + $0x78] sm:$0xff]  }
 0x1de   :  { %1185 = vmatmul.mubr.bf16.gmra.mxu1 %v904_v18  ;;  %v909_v62 = vpack.c.bf16 %v857_v46, %v855_v0  ;;  %v859_v33 = vmax.f32 %v795_v31, 0.0  ;;  %v861_v54 = vmax.f32 %v797_v53, 0.0  ;;  %v716_v8 = vmul.f32 %v3004_v47, %v4182_v20  ;;  %v4184_v18 = vld [vmem:[#allocation38_spill] sm:$0xff]  ;;  %v4187_v0 = vld [vmem:[#allocation17_spill] sm:$0xff]  ;;  %2229 = vmatprep.subr.bf16.mxu0 %v2440_v23 }
 0x1df   :  { %1194 = vmatprep.mubr.bf16.mxu1 %v907_v21  ;;  %v718_v49 = vmul.f32 %v3004_v47, %v4183_v28  ;;  %v794_v61 = vadd.f32 %v3030_v52, %v711_v14  ;;  %v796_v41 = vadd.f32 %v3030_v52, %v713_v26  ;;  %v908_v29 = vpack.c.bf16 %v856_v3, %v854_v7  ;;  %v2441_v20 = vld [vmem:[#allocation8 + $0x38] sm:$0xff]   ;;  %v2442_v28 = vld [vmem:[#allocation8 + $0x70] sm:$0xff]  }
 0x1e0   :  { %v799_v15 = vadd.f32 %v3009_v5, %v716_v8  ;;  %v911_v6 = vpack.c.bf16 %v861_v54, %v859_v33  ;;  %v715_v60 = vmul.f32 %v3014_v63, %v4184_v18  ;;  %v717_v21 = vmul.f32 %v3014_v63, %v4185_v12  ;;  %2230 = vmatpush3.bf16.msra.mxu0 %v2441_v20  ;;  %v2449_v20 = vld [vmem:[#allocation8 + $0x18] sm:$0xff]  }
 0x1e1   :  { %v801_v43 = vadd.f32 %v3009_v5, %v718_v49  ;;  %v858_v2 = vmax.f32 %v794_v61, 0.0  ;;  %v860_v13 = vmax.f32 %v796_v41, 0.0  ;;  %v720_v35 = vmul.f32 %v3004_v47, %v4186_v24  ;;  %v2443_v61 = vld [vmem:[#allocation8 + $0x30] sm:$0xff]   ;;  %2231 = vmatprep.subr.bf16.mxu0 %v2442_v28 }
 0x1e2   :  { %v863_v58 = vmax.f32 %v799_v15, 0.0  ;;  %v722_v46 = vmul.f32 %v3004_v47, %v4187_v0  ;;  %v798_v30 = vadd.f32 %v3030_v52, %v715_v60  ;;  %v800_v36 = vadd.f32 %v3030_v52, %v717_v21  ;;  %v2446_v60 = vld [vmem:[#allocation8 + $0x60] sm:$0xff]  }
 0x1e3   :  { %v865_v40 = vmax.f32 %v801_v43, 0.0  ;;  %v910_v22 = vpack.c.bf16 %v860_v13, %v858_v2  ;;  %v803_v57 = vadd.f32 %v3009_v5, %v720_v35  ;;  %v2445_v43 = vld [vmem:[#allocation8 + $0x28] sm:$0xff]   ;;  %v2447_v35 = vld [vmem:[#allocation8 + $0x20] sm:$0xff]  }
 0x1e4   :  { %v805_v39 = vadd.f32 %v3009_v5, %v722_v46  ;;  %v862_v19 = vmax.f32 %v798_v30, 0.0  ;;  %v864_v63 = vmax.f32 %v800_v36, 0.0  ;;  %2232 = vmatpush3.bf16.msra.mxu0 %v2443_v61 }
 0x1e5   :  { %v913_v16 = vpack.c.bf16 %v865_v40, %v863_v58  ;;  %v867_v44 = vmax.f32 %v803_v57, 0.0 }
 0x1e6   :  { %1195 = vmatmul.mubr.bf16.gmra.mxu1 %v906_v34  ;;  %v869_v45 = vmax.f32 %v805_v39, 0.0  ;;  %v912_v25 = vpack.c.bf16 %v864_v63, %v862_v19 }
 0x1e7   :  { %1204 = vmatprep.mubr.bf16.mxu1 %v909_v62 }
 0x1e8   :  { %v915_v34 = vpack.c.bf16 %v869_v45, %v867_v44  ;;  %v2448_v45 = vld [vmem:[#allocation8 + $0x58] sm:$0xff]  }
 0x1ee   :  { %1205 = vmatmul.mubr.bf16.gmra.mxu1 %v908_v29  ;;  %v2444_v29 = vld [vmem:[#allocation8 + $0x68] sm:$0xff]  }
 0x1ef   :  { %1214 = vmatprep.mubr.bf16.mxu1 %v911_v6  ;;  %2233 = vmatprep.subr.bf16.mxu0 %v2444_v29 }
 0x1f0   :  { %2234 = vmatpush3.bf16.msra.mxu0 %v2445_v43 }
 0x1f1   :  { %2235 = vmatprep.subr.bf16.mxu0 %v2446_v60 }
 0x1f4   :  { %2236 = vmatpush3.bf16.msra.mxu0 %v2447_v35 }
 0x1f5   :  { %2237 = vmatprep.subr.bf16.mxu0 %v2448_v45 }
 0x1f6   :  { %1215 = vmatmul.mubr.bf16.gmra.mxu1 %v910_v22 }
 0x1f7   :  { %1224 = vmatprep.mubr.bf16.mxu1 %v913_v16 }
 0x1f8   :  { %2238 = vmatpush3.bf16.msra.mxu0 %v2449_v20 }
 0x1fe   :  { %1225 = vmatmul.mubr.bf16.gmra.mxu1 %v912_v25 }
 0x1ff   :  { %1234 = vmatprep.mubr.bf16.mxu1 %v915_v34 }
 0x206   :  { %1235 = vmatmul.mubr.bf16.gmra.mxu1 %v3237_v27 }
 0x207   :  { %1244 = vmatprep.mubr.bf16.mxu1 %v3242_v37 }
 0x20e   :  { %1245 = vmatmul.mubr.bf16.gmra.mxu1 %v3244_v1 }
 0x20f   :  { %1254 = vmatprep.mubr.bf16.mxu1 %v3248_v55 }
 0x216   :  { %1255 = vmatmul.mubr.bf16.gmra.mxu1 %v3253_v42 }
 0x217   :  { %1264 = vmatprep.mubr.bf16.mxu1 %v3258_v48 }
 0x21e   :  { %1265 = vmatmul.mubr.bf16.gmra.mxu1 %v3260_v50 }
 0x21f   :  { %1274 = vmatprep.mubr.bf16.mxu1 %v3264_v51 }
 0x226   :  { %1275 = vmatmul.mubr.bf16.gmra.mxu1 %v3269_v59 }
 0x227   :  { %1284 = vmatprep.mubr.bf16.mxu1 %v3274_v38 }
 0x22e   :  { %1285 = vmatmul.mubr.bf16.gmra.mxu1 %v3276_v11 }
 0x22f   :  { %1294 = vmatprep.mubr.bf16.mxu1 %v3280_v32 }
 0x236   :  { %1295 = vmatmul.mubr.bf16.gmra.mxu1 %v3287_v56 }
 0x237   :  { %1304 = vmatprep.mubr.bf16.mxu1 %v3291_v9 }
 0x23e   :  { %1305 = vmatmul.mubr.bf16.gmra.mxu1 %v3293_v10 }
 0x286   :  { %v3358_v47 = vpop.f32.mrf.mxu1 }
 0x287   :  { %v1389_v58 = vmul.f32 %v3358_v47, %v3358_v47 }
 0x288   :  { %v3360_v5 = vpop.f32.mrf.mxu1 }
 0x289   :  { %v1390_v12 = vmul.f32 %v3360_v5, %v3360_v5 }
 0x28a   :  { %v3362_v52 = vpop.f32.mrf.mxu1 }
 0x28b   :  { %v1391_v6 = vmul.f32 %v3362_v52, %v3362_v52  ;;  %v1315_v40 = vadd.f32 %v3362_v52, %v3358_v47 }
 0x28c   :  { %v3364_v27 = vpop.f32.mrf.mxu1 }
 0x28d   :  { %v1392_v2 = vmul.f32 %v3364_v27, %v3364_v27  ;;  %v1453_v0 = vadd.f32 %v1391_v6, %v1389_v58  ;;  %v1352_v46 = vadd.f32 %v3364_v27, %v3360_v5 }
 0x28e   :  { %v3366_v37 = vpop.f32.mrf.mxu1 }
 0x28f   :  { %v1393_v18 = vmul.f32 %v3366_v37, %v3366_v37  ;;  %v1316_v30 = vadd.f32 %v1315_v40, %v3366_v37  ;;  %v1490_v22 = vadd.f32 %v1392_v2, %v1390_v12 }
 0x290   :  { %v3368_v1 = vpop.f32.mrf.mxu1 }
 0x291   :  { %v1394_v21 = vmul.f32 %v3368_v1, %v3368_v1  ;;  %v1454_v16 = vadd.f32 %v1453_v0, %v1393_v18  ;;  %v1353_v19 = vadd.f32 %v1352_v46, %v3368_v1 }
 0x292   :  { %v3370_v55 = vpop.f32.mrf.mxu1 }
 0x293   :  { %v1395_v36 = vmul.f32 %v3370_v55, %v3370_v55  ;;  %v1317_v63 = vadd.f32 %v1316_v30, %v3370_v55  ;;  %v1491_v25 = vadd.f32 %v1490_v22, %v1394_v21  ;;  %v2450_v21 = vld [vmem:[#allocation8 + $0x50] sm:$0xff]  }
 0x294   :  { %v3372_v42 = vpop.f32.mrf.mxu1  ;;  %v2451_v30 = vld [vmem:[#allocation8 + $0x10] sm:$0xff]   ;;  %2239 = vmatprep.subr.bf16.mxu0 %v2450_v21 }
 0x295   :  { %v1396_v57 = vmul.f32 %v3372_v42, %v3372_v42  ;;  %v1455_v28 = vadd.f32 %v1454_v16, %v1395_v36  ;;  %v1354_v61 = vadd.f32 %v1353_v19, %v3372_v42  ;;  %2240 = vmatpush3.bf16.msra.mxu0 %v2451_v30 }
 0x296   :  { %v3374_v48 = vpop.f32.mrf.mxu1 }
 0x297   :  { %4188 = vst [vmem:[#allocation42_spill] sm:$0xff] %v3374_v48  ;;  %v1397_v44 = vmul.f32 %v3374_v48, %v3374_v48  ;;  %v1318_v29 = vadd.f32 %v1317_v63, %v3374_v48  ;;  %v1492_v6 = vadd.f32 %v1491_v25, %v1396_v57 }
 0x298   :  { %v3376_v50 = vpop.f32.mrf.mxu1 }
 0x299   :  { %4189 = vst [vmem:[#allocation18_spill] sm:$0xff] %v3376_v50  ;;  %v1398_v34 = vmul.f32 %v3376_v50, %v3376_v50  ;;  %v1456_v40 = vadd.f32 %v1455_v28, %v1397_v44  ;;  %v1355_v18 = vadd.f32 %v1354_v61, %v3376_v50  ;;  %v2452_v28 = vld [vmem:[#allocation8 + $0x48] sm:$0xff]  }
 0x29a   :  { %v3378_v51 = vpop.f32.mrf.mxu1  ;;  %2241 = vmatprep.subr.bf16.mxu0 %v2452_v28 }
 0x29b   :  { %4190 = vst [vmem:[#allocation19_spill] sm:$0xff] %v3378_v51  ;;  %v1399_v43 = vmul.f32 %v3378_v51, %v3378_v51  ;;  %v1319_v60 = vadd.f32 %v1318_v29, %v3378_v51  ;;  %v1493_v35 = vadd.f32 %v1492_v6, %v1398_v34  ;;  %v2453_v6 = vld [vmem:[#allocation8 + $0x8] sm:$0xff]  }
 0x29c   :  { %v3380_v59 = vpop.f32.mrf.mxu1  ;;  %2242 = vmatpush3.bf16.msra.mxu0 %v2453_v6 }
 0x29d   :  { %4191 = vst [vmem:[#allocation20_spill] sm:$0xff] %v3380_v59  ;;  %v1400_v2 = vmul.f32 %v3380_v59, %v3380_v59  ;;  %v1457_v36 = vadd.f32 %v1456_v40, %v1399_v43  ;;  %v1356_v22 = vadd.f32 %v1355_v18, %v3380_v59 }
 0x29e   :  { %v3382_v38 = vpop.f32.mrf.mxu1 }
 0x29f   :  { %4192 = vst [vmem:[#allocation21_spill] sm:$0xff] %v3382_v38  ;;  %v1401_v12 = vmul.f32 %v3382_v38, %v3382_v38  ;;  %v1320_v57 = vadd.f32 %v1319_v60, %v3382_v38  ;;  %v1494_v19 = vadd.f32 %v1493_v35, %v1400_v2 }
 0x2a0   :  { %v3384_v11 = vpop.f32.mrf.mxu1 }
 0x2a1   :  { %4193 = vst [vmem:[#allocation23_spill] sm:$0xff] %v3384_v11  ;;  %v1402_v0 = vmul.f32 %v3384_v11, %v3384_v11  ;;  %v1458_v45 = vadd.f32 %v1457_v36, %v1401_v12  ;;  %v1357_v25 = vadd.f32 %v1356_v22, %v3384_v11 }
 0x2a2   :  { %v3386_v32 = vpop.f32.mrf.mxu1 }
 0x2a3   :  { %4194 = vst [vmem:[#allocation25_spill] sm:$0xff] %v3386_v32  ;;  %v1403_v16 = vmul.f32 %v3386_v32, %v3386_v32  ;;  %v1321_v34 = vadd.f32 %v1320_v57, %v3386_v32  ;;  %v1495_v61 = vadd.f32 %v1494_v19, %v1402_v0  ;;  %v2454_v57 = vld [vmem:[#allocation8 + $0x40] sm:$0xff]  }
 0x2a4   :  { %v3388_v56 = vpop.f32.mrf.mxu1  ;;  %2243 = vmatprep.subr.bf16.mxu0 %v2454_v57 }
 0x2a5   :  { %4195 = vst [vmem:[#allocation22_spill] sm:$0xff] %v3388_v56  ;;  %v1404_v63 = vmul.f32 %v3388_v56, %v3388_v56  ;;  %v1459_v2 = vadd.f32 %v1458_v45, %v1403_v16  ;;  %v1358_v40 = vadd.f32 %v1357_v25, %v3388_v56  ;;  %v2455_v45 = vld [vmem:[#allocation8] sm:$0xff]  }
 0x2a6   :  { %v3390_v9 = vpop.f32.mrf.mxu1  ;;  %2244 = vmatpush3.bf16.msra.mxu0 %v2455_v45 }
 0x2a7   :  { %4196 = vst [vmem:[#allocation24_spill] sm:$0xff] %v3390_v9  ;;  %v1405_v20 = vmul.f32 %v3390_v9, %v3390_v9  ;;  %v1322_v18 = vadd.f32 %v1321_v34, %v3390_v9  ;;  %v1496_v12 = vadd.f32 %v1495_v61, %v1404_v63 }
 0x2a8   :  { %v3392_v10 = vpop.f32.mrf.mxu1 }
 0x2a9   :  { %4197 = vst [vmem:[#allocation27_spill] sm:$0xff] %v3392_v10  ;;  %v1406_v29 = vmul.f32 %v3392_v10, %v3392_v10  ;;  %v1460_v0 = vadd.f32 %v1459_v2, %v1405_v20  ;;  %v1359_v30 = vadd.f32 %v1358_v40, %v3392_v10 }
 0x2aa   :  { %v3394_v31 = vpop.f32.mrf.mxu1 }
 0x2ab   :  { %4198 = vst [vmem:[#allocation29_spill] sm:$0xff] %v3394_v31  ;;  %v1407_v60 = vmul.f32 %v3394_v31, %v3394_v31  ;;  %v1323_v36 = vadd.f32 %v1322_v18, %v3394_v31  ;;  %v1497_v16 = vadd.f32 %v1496_v12, %v1406_v29 }
 0x2ac   :  { %v3396_v53 = vpop.f32.mrf.mxu1 }
 0x2ad   :  { %4199 = vst [vmem:[#allocation26_spill] sm:$0xff] %v3396_v53  ;;  %v1408_v21 = vmul.f32 %v3396_v53, %v3396_v53  ;;  %v1461_v25 = vadd.f32 %v1460_v0, %v1407_v60  ;;  %v1360_v34 = vadd.f32 %v1359_v30, %v3396_v53 }
 0x2ae   :  { %v3398_v62 = vpop.f32.mrf.mxu1 }
 0x2af   :  { %4200 = vst [vmem:[#allocation28_spill] sm:$0xff] %v3398_v62  ;;  %v1409_v22 = vmul.f32 %v3398_v62, %v3398_v62  ;;  %v1324_v20 = vadd.f32 %v1323_v36, %v3398_v62  ;;  %v1498_v61 = vadd.f32 %v1497_v16, %v1408_v21 }
 0x2b0   :  { %v3400_v7 = vpop.f32.mrf.mxu1 }
 0x2b1   :  { %4201 = vst [vmem:[#allocation31_spill] sm:$0xff] %v3400_v7  ;;  %v1410_v19 = vmul.f32 %v3400_v7, %v3400_v7  ;;  %v1462_v2 = vadd.f32 %v1461_v25, %v1409_v22  ;;  %v1361_v40 = vadd.f32 %v1360_v34, %v3400_v7 }
 0x2b2   :  { %v3402_v3 = vpop.f32.mrf.mxu1 }
 0x2b3   :  { %4202 = vst [vmem:[#allocation33_spill] sm:$0xff] %v3402_v3  ;;  %v1411_v28 = vmul.f32 %v3402_v3, %v3402_v3  ;;  %v1325_v18 = vadd.f32 %v1324_v20, %v3402_v3  ;;  %v1499_v12 = vadd.f32 %v1498_v61, %v1410_v19 }
 0x2b4   :  { %v3404_v33 = vpop.f32.mrf.mxu1 }
 0x2b5   :  { %4203 = vst [vmem:[#allocation30_spill] sm:$0xff] %v3404_v33  ;;  %v1412_v6 = vmul.f32 %v3404_v33, %v3404_v33  ;;  %v1463_v21 = vadd.f32 %v1462_v2, %v1411_v28  ;;  %v1362_v36 = vadd.f32 %v1361_v40, %v3404_v33 }
 0x2b6   :  { %v3406_v54 = vpop.f32.mrf.mxu1 }
 0x2b7   :  { %4204 = vst [vmem:[#allocation32_spill] sm:$0xff] %v3406_v54  ;;  %v1413_v60 = vmul.f32 %v3406_v54, %v3406_v54  ;;  %v1326_v57 = vadd.f32 %v1325_v18, %v3406_v54  ;;  %v1500_v16 = vadd.f32 %v1499_v12, %v1412_v6 }
 0x2b8   :  { %v3408_v17 = vpop.f32.mrf.mxu1 }
 0x2b9   :  { %4205 = vst [vmem:[#allocation35_spill] sm:$0xff] %v3408_v17  ;;  %v1414_v0 = vmul.f32 %v3408_v17, %v3408_v17  ;;  %v1464_v19 = vadd.f32 %v1463_v21, %v1413_v60  ;;  %v1363_v34 = vadd.f32 %v1362_v36, %v3408_v17 }
 0x2ba   :  { %v3410_v14 = vpop.f32.mrf.mxu1 }
 0x2bb   :  { %4206 = vst [vmem:[#allocation37_spill] sm:$0xff] %v3410_v14  ;;  %v1415_v22 = vmul.f32 %v3410_v14, %v3410_v14  ;;  %v1327_v20 = vadd.f32 %v1326_v57, %v3410_v14  ;;  %v1501_v61 = vadd.f32 %v1500_v16, %v1414_v0 }
 0x2bc   :  { %v3412_v26 = vpop.f32.mrf.mxu1 }
 0x2bd   :  { %4207 = vst [vmem:[#allocation34_spill] sm:$0xff] %v3412_v26  ;;  %v1416_v45 = vmul.f32 %v3412_v26, %v3412_v26  ;;  %v1465_v6 = vadd.f32 %v1464_v19, %v1415_v22  ;;  %v1364_v18 = vadd.f32 %v1363_v34, %v3412_v26 }
 0x2be   :  { %v3414_v8 = vpop.f32.mrf.mxu1 }
 0x2bf   :  { %4208 = vst [vmem:[#allocation36_spill] sm:$0xff] %v3414_v8  ;;  %v1417_v28 = vmul.f32 %v3414_v8, %v3414_v8  ;;  %v1328_v12 = vadd.f32 %v1327_v20, %v3414_v8  ;;  %v1502_v21 = vadd.f32 %v1501_v61, %v1416_v45 }
 0x2c0   :  { %v3416_v49 = vpop.f32.mrf.mxu1 }
 0x2c1   :  { %4209 = vst [vmem:[#allocation39_spill] sm:$0xff] %v3416_v49  ;;  %v1418_v2 = vmul.f32 %v3416_v49, %v3416_v49  ;;  %v1466_v0 = vadd.f32 %v1465_v6, %v1417_v28  ;;  %v1365_v16 = vadd.f32 %v1364_v18, %v3416_v49 }
 0x2c2   :  { %v3418_v41 = vpop.f32.mrf.mxu1 }
 0x2c3   :  { %4210 = vst [vmem:[#allocation41_spill] sm:$0xff] %v3418_v41  ;;  %v1419_v60 = vmul.f32 %v3418_v41, %v3418_v41  ;;  %v1329_v14 = vadd.f32 %v1328_v12, %v3418_v41  ;;  %v1503_v19 = vadd.f32 %v1502_v21, %v1418_v2 }
 0x2c4   :  { %v3420_v15 = vpop.f32.mrf.mxu1 }
 0x2c5   :  { %4211 = vst [vmem:[#allocation38_spill] sm:$0xff] %v3420_v15  ;;  %v1420_v36 = vmul.f32 %v3420_v15, %v3420_v15  ;;  %v1467_v45 = vadd.f32 %v1466_v0, %v1419_v60  ;;  %v1366_v61 = vadd.f32 %v1365_v16, %v3420_v15 }
 0x2c6   :  { %v3426_v13 = vpop.f32.mrf.mxu1 }
 0x2c7   :  { %v1421_v22 = vmul.f32 %v3426_v13, %v3426_v13  ;;  %v1330_v8 = vadd.f32 %v1329_v14, %v3426_v13  ;;  %v1504_v6 = vadd.f32 %v1503_v19, %v1420_v36 }
 0x2c8   :  { %v3438_v24 = vpop.f32.mrf.mxu1 }
 0x2c9   :  { %4212 = vst [vmem:[#allocation40_spill] sm:$0xff] %v3438_v24  ;;  %v1422_v34 = vmul.f32 %v3438_v24, %v3438_v24  ;;  %v1468_v2 = vadd.f32 %v1467_v45, %v1421_v22  ;;  %v1367_v21 = vadd.f32 %v1366_v61, %v3438_v24 }
 0x2ca   :  { %v3447_v39 = vpop.f32.mrf.mxu1 }
 0x2cb   :  { %v1423_v28 = vmul.f32 %v3447_v39, %v3447_v39  ;;  %v1331_v41 = vadd.f32 %v1330_v8, %v3447_v39  ;;  %v1505_v0 = vadd.f32 %v1504_v6, %v1422_v34 }
 0x2cc   :  { %v3455_v23 = vpop.f32.mrf.mxu1 }
 0x2cd   :  { %4213 = vst [vmem:[#allocation16_spill] sm:$0xff] %v3455_v23  ;;  %v1424_v18 = vmul.f32 %v3455_v23, %v3455_v23  ;;  %v1469_v36 = vadd.f32 %v1468_v2, %v1423_v28  ;;  %v1368_v19 = vadd.f32 %v1367_v21, %v3455_v23 }
 0x2ce   :  { %v3463_v58 = vpop.f32.mrf.mxu1 }
 0x2cf   :  { %v1425_v60 = vmul.f32 %v3463_v58, %v3463_v58  ;;  %v1332_v15 = vadd.f32 %v1331_v41, %v3463_v58  ;;  %v1506_v45 = vadd.f32 %v1505_v0, %v1424_v18 }
 0x2d0   :  { %v3471_v46 = vpop.f32.mrf.mxu1 }
 0x2d1   :  { %v1426_v14 = vmul.f32 %v3471_v46, %v3471_v46  ;;  %v1470_v34 = vadd.f32 %v1469_v36, %v1425_v60  ;;  %v1369_v6 = vadd.f32 %v1368_v19, %v3471_v46 }
 0x2d2   :  { %v3479_v44 = vpop.f32.mrf.mxu1 }
 0x2d3   :  { %v1427_v22 = vmul.f32 %v3479_v44, %v3479_v44  ;;  %v1333_v24 = vadd.f32 %v1332_v15, %v3479_v44  ;;  %v1507_v2 = vadd.f32 %v1506_v45, %v1426_v14 }
 0x2d4   :  { %v3487_v43 = vpop.f32.mrf.mxu1 }
 0x2d5   :  { %v1428_v8 = vmul.f32 %v3487_v43, %v3487_v43  ;;  %v1471_v18 = vadd.f32 %v1470_v34, %v1427_v22  ;;  %v1370_v0 = vadd.f32 %v1369_v6, %v3487_v43 }
 0x2d6   :  { %v3495_v35 = vpop.f32.mrf.mxu1 }
 0x2d7   :  { %v1429_v28 = vmul.f32 %v3495_v35, %v3495_v35  ;;  %v1334_v23 = vadd.f32 %v1333_v24, %v3495_v35  ;;  %v1508_v36 = vadd.f32 %v1507_v2, %v1428_v8 }
 0x2d8   :  { %v3503_v63 = vpop.f32.mrf.mxu1 }
 0x2d9   :  { %v1430_v41 = vmul.f32 %v3503_v63, %v3503_v63  ;;  %v1472_v14 = vadd.f32 %v1471_v18, %v1429_v28  ;;  %v1371_v45 = vadd.f32 %v1370_v0, %v3503_v63 }
 0x2da   :  { %v3511_v29 = vpop.f32.mrf.mxu1 }
 0x2db   :  { %v1431_v60 = vmul.f32 %v3511_v29, %v3511_v29  ;;  %v1335_v49 = vadd.f32 %v1334_v23, %v3511_v29  ;;  %v1509_v34 = vadd.f32 %v1508_v36, %v1430_v41 }
 0x2dc   :  { %v3519_v30 = vpop.f32.mrf.mxu1 }
 0x2dd   :  { %v1432_v15 = vmul.f32 %v3519_v30, %v3519_v30  ;;  %v1473_v8 = vadd.f32 %v1472_v14, %v1431_v60  ;;  %v1372_v2 = vadd.f32 %v1371_v45, %v3519_v30 }
 0x2de   :  { %v3527_v25 = vpop.f32.mrf.mxu1 }
 0x2df   :  { %v1433_v22 = vmul.f32 %v3527_v25, %v3527_v25  ;;  %v1336_v54 = vadd.f32 %v1335_v49, %v3527_v25  ;;  %v1510_v18 = vadd.f32 %v1509_v34, %v1432_v15 }
 0x2e0   :  { %v3535_v40 = vpop.f32.mrf.mxu1 }
 0x2e1   :  { %v1434_v24 = vmul.f32 %v3535_v40, %v3535_v40  ;;  %v1474_v41 = vadd.f32 %v1473_v8, %v1433_v22  ;;  %v1373_v36 = vadd.f32 %v1372_v2, %v3535_v40 }
 0x2e2   :  { %v3543_v57 = vpop.f32.mrf.mxu1 }
 0x2e3   :  { %v1435_v28 = vmul.f32 %v3543_v57, %v3543_v57  ;;  %v1337_v26 = vadd.f32 %v1336_v54, %v3543_v57  ;;  %v1511_v14 = vadd.f32 %v1510_v18, %v1434_v24 }
 0x2e4   :  { %v3551_v20 = vpop.f32.mrf.mxu1 }
 0x2e5   :  { %v1436_v23 = vmul.f32 %v3551_v20, %v3551_v20  ;;  %v1475_v15 = vadd.f32 %v1474_v41, %v1435_v28  ;;  %v1374_v34 = vadd.f32 %v1373_v36, %v3551_v20 }
 0x2e6   :  { %v3559_v12 = vpop.f32.mrf.mxu1 }
 0x2e7   :  { %v1437_v60 = vmul.f32 %v3559_v12, %v3559_v12  ;;  %v1338_v17 = vadd.f32 %v1337_v26, %v3559_v12  ;;  %v1512_v8 = vadd.f32 %v1511_v14, %v1436_v23 }
 0x2e8   :  { %v3567_v16 = vpop.f32.mrf.mxu1 }
 0x2e9   :  { %v1438_v49 = vmul.f32 %v3567_v16, %v3567_v16  ;;  %v1476_v24 = vadd.f32 %v1475_v15, %v1437_v60  ;;  %v1375_v18 = vadd.f32 %v1374_v34, %v3567_v16 }
 0x2ea   :  { %v3575_v61 = vpop.f32.mrf.mxu1 }
 0x2eb   :  { %v1439_v22 = vmul.f32 %v3575_v61, %v3575_v61  ;;  %v1339_v3 = vadd.f32 %v1338_v17, %v3575_v61  ;;  %v1513_v41 = vadd.f32 %v1512_v8, %v1438_v49 }
 0x2ec   :  { %v3583_v21 = vpop.f32.mrf.mxu1 }
 0x2ed   :  { %v1440_v54 = vmul.f32 %v3583_v21, %v3583_v21  ;;  %v1477_v23 = vadd.f32 %v1476_v24, %v1439_v22  ;;  %v1376_v14 = vadd.f32 %v1375_v18, %v3583_v21 }
 0x2ee   :  { %v3591_v19 = vpop.f32.mrf.mxu1 }
 0x2ef   :  { %v1441_v28 = vmul.f32 %v3591_v19, %v3591_v19  ;;  %v1340_v62 = vadd.f32 %v1339_v3, %v3591_v19  ;;  %v1514_v15 = vadd.f32 %v1513_v41, %v1440_v54 }
 0x2f0   :  { %v3599_v6 = vpop.f32.mrf.mxu1 }
 0x2f1   :  { %v1442_v26 = vmul.f32 %v3599_v6, %v3599_v6  ;;  %v1478_v49 = vadd.f32 %v1477_v23, %v1441_v28  ;;  %v1377_v8 = vadd.f32 %v1376_v14, %v3599_v6 }
 0x2f2   :  { %v3607_v0 = vpop.f32.mrf.mxu1 }
 0x2f3   :  { %v1443_v60 = vmul.f32 %v3607_v0, %v3607_v0  ;;  %v1341_v33 = vadd.f32 %v1340_v62, %v3607_v0  ;;  %v1515_v24 = vadd.f32 %v1514_v15, %v1442_v26 }
 0x2f4   :  { %v3615_v45 = vpop.f32.mrf.mxu1 }
 0x2f5   :  { %v1444_v17 = vmul.f32 %v3615_v45, %v3615_v45  ;;  %v1479_v54 = vadd.f32 %v1478_v49, %v1443_v60  ;;  %v1378_v41 = vadd.f32 %v1377_v8, %v3615_v45 }
 0x2f6   :  { %v3623_v2 = vpop.f32.mrf.mxu1 }
 0x2f7   :  { %v1445_v22 = vmul.f32 %v3623_v2, %v3623_v2  ;;  %v1342_v7 = vadd.f32 %v1341_v33, %v3623_v2  ;;  %v1516_v23 = vadd.f32 %v1515_v24, %v1444_v17 }
 0x2f8   :  { %v3631_v36 = vpop.f32.mrf.mxu1 }
 0x2f9   :  { %v1446_v3 = vmul.f32 %v3631_v36, %v3631_v36  ;;  %v1480_v26 = vadd.f32 %v1479_v54, %v1445_v22  ;;  %v1379_v15 = vadd.f32 %v1378_v41, %v3631_v36 }
 0x2fa   :  { %v3639_v34 = vpop.f32.mrf.mxu1 }
 0x2fb   :  { %v1447_v28 = vmul.f32 %v3639_v34, %v3639_v34  ;;  %v1343_v31 = vadd.f32 %v1342_v7, %v3639_v34  ;;  %v1517_v49 = vadd.f32 %v1516_v23, %v1446_v3 }
 0x2fc   :  { %v3647_v18 = vpop.f32.mrf.mxu1 }
 0x2fd   :  { %v1448_v62 = vmul.f32 %v3647_v18, %v3647_v18  ;;  %v1481_v33 = vadd.f32 %v1480_v26, %v1447_v28  ;;  %v1380_v9 = vadd.f32 %v1379_v15, %v3647_v18 }
 0x2fe   :  { %v3655_v14 = vpop.f32.mrf.mxu1 }
 0x2ff   :  { %v1449_v60 = vmul.f32 %v3655_v14, %v3655_v14  ;;  %v1344_v17 = vadd.f32 %v1343_v31, %v3655_v14  ;;  %v1518_v53 = vadd.f32 %v1517_v49, %v1448_v62 }
 0x300   :  { %v3661_v8 = vpop.f32.mrf.mxu1 }
 0x301   :  { %4214 = vst [vmem:[#allocation17_spill] sm:$0xff] %v3661_v8  ;;  %v1450_v24 = vmul.f32 %v3661_v8, %v3661_v8  ;;  %v1482_v54 = vadd.f32 %v1481_v33, %v1449_v60  ;;  %v1381_v7 = vadd.f32 %v1380_v9, %v3661_v8 }
 0x302   :  { %v3667_v22 = vpop.f32.mrf.mxu1 }
 0x303   :  { %4215 = vst [vmem:[#allocation43_spill] sm:$0xff] %v3667_v22  ;;  %v1345_v41 = vadd.f32 %v1344_v17, %v3667_v22  ;;  %v1451_v3 = vmul.f32 %v3667_v22, %v3667_v22  ;;  %v1519_v23 = vadd.f32 %v1518_v53, %v1450_v24 }
 0x304   :  { %v1312_v28 = vpop.f32.mrf.mxu1 }
 0x305   :  { %v1346_v26 = vrot.slane %v1345_v41, 4  ;;  %v1483_v15 = vadd.f32 %v1482_v54, %v1451_v3  ;;  %v1382_v10 = vadd.f32 %v1381_v7, %v1312_v28  ;;  %v1452_v31 = vmul.f32 %v1312_v28, %v1312_v28 }
 0x307   :  { %v1347_v32 = vadd.f32 %v1346_v26, %v1345_v41  ;;  %v1484_v38 = vrot.slane %v1483_v15, 4  ;;  %v1383_v56 = vrot.slane %v1382_v10, 4  ;;  %v1520_v62 = vadd.f32 %v1519_v23, %v1452_v31 }
 0x309   :  { %v1348_v49 = vrot.slane %v1347_v32, 2  ;;  %v1485_v11 = vadd.f32 %v1484_v38, %v1483_v15  ;;  %v1384_v60 = vadd.f32 %v1383_v56, %v1382_v10  ;;  %v1521_v33 = vrot.slane %v1520_v62, 4 }
 0x30b   :  { %v1349_v9 = vadd.f32 %v1348_v49, %v1347_v32  ;;  %v1486_v59 = vrot.slane %v1485_v11, 2  ;;  %v1385_v17 = vrot.slane %v1384_v60, 2  ;;  %v1522_v51 = vadd.f32 %v1521_v33, %v1520_v62 }
 0x30d   :  { %v1350_v50 = vrot.slane %v1349_v9, 1  ;;  %v1487_v48 = vadd.f32 %v1486_v59, %v1485_v11  ;;  %v1386_v53 = vadd.f32 %v1385_v17, %v1384_v60  ;;  %v1523_v24 = vrot.slane %v1522_v51, 2 }
 0x30e   :  { %v1554_v17 = vsub.s32 6, %v2999_v4 }
 0x30f   :  { %v1351_v22 = vadd.f32 %v1350_v50, %v1349_v9  ;;  %v1488_v54 = vrot.slane %v1487_v48, 1  ;;  %v1387_v7 = vrot.slane %v1386_v53, 1  ;;  %v1524_v3 = vadd.f32 %v1523_v24, %v1522_v51 }
 0x310   :  { %v1550_v9 = vsub.s32 2, %v2999_v4 }
 0x311   :  { %v1489_v41 = vadd.f32 %v1488_v54, %v1487_v48  ;;  %v1527_v26 = vmul.f32 0.00390625, %v1351_v22  ;;  %v1388_v8 = vadd.f32 %v1387_v7, %v1386_v53  ;;  %v1525_v23 = vrot.slane %v1524_v3, 1  ;;  %v2464_v53 = vld [vmem:[#allocation10] sm:$0xff] }
 0x313   :  { %v1529_v31 = vmul.f32 0.00390625, %v1489_v41  ;;  %v1531_v38 = vmul.f32 %v1527_v26, %v1527_v26  ;;  %v1526_v56 = vadd.f32 %v1525_v23, %v1524_v3  ;;  %v1528_v10 = vmul.f32 0.00390625, %v1388_v8 }
 0x315   :  { %v1533_v32 = vsub.f32 %v1529_v31, %v1531_v38  ;;  %v1530_v15 = vmul.f32 0.00390625, %v1526_v56  ;;  %v1532_v49 = vmul.f32 %v1528_v10, %v1528_v10  ;;  %v1645_v56 = vsub.s32 7, %v2999_v4 }
 0x317   :  { %v1535_v62 = vmax.f32 %v1533_v32, 0.0  ;;  %v1534_v33 = vsub.f32 %v1530_v15, %v1532_v49  ;;  %v1641_v15 = vsub.s32 3, %v2999_v4 }
 0x319   :  { %v1537_v59 = vadd.f32 1e-05, %v1535_v62  ;;  %v1536_v11 = vmax.f32 %v1534_v33, 0.0 }
 0x31b   :  { %v1538_v60 = vadd.f32 1e-05, %v1536_v11  ;;  %2460 = vrsqrt.f32 %v1537_v59 }
 0x31d   :  { %2462 = vrsqrt.f32 %v1538_v60 }
 0x328   :  { %v2461_v50 = vpop.eup %2460 }
 0x32a   :  { %v2463_v51 = vpop.eup %2462 }
 0x32b   :  { %v1543_v48 = vcombine.low %v2461_v50, %v2463_v51 }
 0x32d   :  { %v1544_v22 = vrot.slane %v1543_v48, 6 }
 0x32f   :  { %v1546_v8 = vmul.f32 %v2464_v53, %v1544_v22  ;;  %v4216_v22 = vld [vmem:[#allocation17_spill] sm:$0xff] }
 0x331   :  { %v1551_v24 = vrot.slane %v1546_v8, %v1550_v9  ;;  %v1555_v54 = vrot.slane %v1546_v8, %v1554_v17 }
 0x333   :  { %v1558_v7 = vmul.f32 %v1551_v24, %v1527_v26  ;;  %v1559_v3 = vmul.f32 %v1555_v54, %v1528_v10  ;;  %v3675_v41 = vrot.slane %v1555_v54, %v1550_v9  ;;  %v3685_v59 = vrot.slane %v1551_v24, %v1550_v9  ;;  %v4217_v9 = vld [vmem:[#allocation43_spill] sm:$0xff] }
 0x335   :  { %v1562_v23 = vcombine.low %v1558_v7, %v1559_v3  ;;  %v1637_v31 = vmul.f32 %v3675_v41, %v1312_v28  ;;  %v1574_v10 = vmul.f32 %v3685_v59, %v3358_v47  ;;  %v1575_v28 = vmul.f32 %v3675_v41, %v3360_v5 }
 0x336   :  { %v1576_v11 = vmul.f32 %v3685_v59, %v3362_v52  ;;  %v1577_v4 = vmul.f32 %v3675_v41, %v3364_v27  ;;  %v3697_v60 = vmul.f32 %v3685_v59, %v3366_v37  ;;  %v1579_v51 = vmul.f32 %v3675_v41, %v3368_v1 }
 0x337   :  { %v1563_v38 = vrot.slane %v1562_v23, 5  ;;  %v3705_v47 = vmul.f32 %v3685_v59, %v3370_v55  ;;  %v1581_v5 = vmul.f32 %v3675_v41, %v3372_v42  ;;  %v1606_v52 = vmul.f32 %v3685_v59, %v3426_v13 }
 0x338   :  { %v1608_v27 = vmul.f32 %v3685_v59, %v3447_v39  ;;  %v1610_v37 = vmul.f32 %v3685_v59, %v3463_v58  ;;  %v1611_v48 = vmul.f32 %v3675_v41, %v3471_v46  ;;  %v1612_v1 = vmul.f32 %v3685_v59, %v3479_v44 }
 0x339   :  { %v1565_v32 = vsub.f32 %v2464_v53, %v1563_v38  ;;  %v1613_v55 = vmul.f32 %v3675_v41, %v3487_v43  ;;  %v1614_v42 = vmul.f32 %v3685_v59, %v3495_v35  ;;  %v1615_v13 = vmul.f32 %v3675_v41, %v3503_v63 }
 0x33a   :  { %v1616_v39 = vmul.f32 %v3685_v59, %v3511_v29  ;;  %v1617_v58 = vmul.f32 %v3675_v41, %v3519_v30  ;;  %v1618_v46 = vmul.f32 %v3685_v59, %v3527_v25  ;;  %v1619_v44 = vmul.f32 %v3675_v41, %v3535_v40 }
 0x33b   :  { %v1646_v49 = vrot.slane %v1565_v32, %v1645_v56  ;;  %v1642_v26 = vrot.slane %v1565_v32, %v1641_v15  ;;  %v1620_v43 = vmul.f32 %v3685_v59, %v3543_v57  ;;  %v1621_v35 = vmul.f32 %v3675_v41, %v3551_v20 }
 0x33c   :  { %v1622_v63 = vmul.f32 %v3685_v59, %v3559_v12  ;;  %v1623_v29 = vmul.f32 %v3675_v41, %v3567_v16  ;;  %v1624_v30 = vmul.f32 %v3685_v59, %v3575_v61  ;;  %v1625_v25 = vmul.f32 %v3675_v41, %v3583_v21 }
 0x33d   :  { %v3680_v62 = vrot.slane %v1646_v49, %v1641_v15  ;;  %v3699_v50 = vrot.slane %v1642_v26, %v1641_v15  ;;  %v1626_v40 = vmul.f32 %v3685_v59, %v3591_v19  ;;  %v1627_v57 = vmul.f32 %v3675_v41, %v3599_v6 }
 0x33e   :  { %v1628_v20 = vmul.f32 %v3685_v59, %v3607_v0  ;;  %v1629_v12 = vmul.f32 %v3675_v41, %v3615_v45  ;;  %v1630_v16 = vmul.f32 %v3685_v59, %v3623_v2  ;;  %v1631_v61 = vmul.f32 %v3675_v41, %v3631_v36 }
 0x33f   :  { %v3683_v33 = vadd.f32 %v3680_v62, %v1637_v31  ;;  %v1632_v21 = vmul.f32 %v3685_v59, %v3639_v34  ;;  %v1633_v19 = vmul.f32 %v3675_v41, %v3647_v18  ;;  %v1634_v6 = vmul.f32 %v3685_v59, %v3655_v14 }
 0x340   :  { %v1635_v0 = vmul.f32 %v3675_v41, %v4216_v22  ;;  %v1636_v45 = vmul.f32 %v3685_v59, %v4217_v9  ;;  %v1657_v2 = vadd.f32 %v3699_v50, %v1574_v10  ;;  %v1658_v17 = vadd.f32 %v3680_v62, %v1575_v28  ;;  %v4223_v22 = vld [vmem:[#allocation22_spill] sm:$0xff] }
 0x341   :  { %v1659_v36 = vadd.f32 %v3699_v50, %v1576_v11  ;;  %v1660_v34 = vadd.f32 %v3680_v62, %v1577_v4  ;;  %v1662_v53 = vadd.f32 %v3680_v62, %v1579_v51  ;;  %v3773_v18 = vadd.f32 %v3699_v50, %v1606_v52 }
 0x342   :  { %v3776_v14 = vadd.f32 %v3699_v50, %v1608_v27  ;;  %v1664_v8 = vadd.f32 %v3680_v62, %v1581_v5  ;;  %v3780_v24 = vadd.f32 %v3699_v50, %v1610_v37  ;;  %v3783_v54 = vadd.f32 %v3680_v62, %v1611_v48 }
 0x343   :  { %v3786_v7 = vadd.f32 %v3699_v50, %v1612_v1  ;;  %v3789_v3 = vadd.f32 %v3680_v62, %v1613_v55  ;;  %v3792_v23 = vadd.f32 %v3699_v50, %v1614_v42  ;;  %v3795_v31 = vadd.f32 %v3680_v62, %v1615_v13 }
 0x344   :  { %v3798_v38 = vadd.f32 %v3699_v50, %v1616_v39  ;;  %v3801_v56 = vadd.f32 %v3680_v62, %v1617_v58  ;;  %v3804_v32 = vadd.f32 %v3699_v50, %v1618_v46  ;;  %v3807_v15 = vadd.f32 %v3680_v62, %v1619_v44 }
 0x345   :  { %v3810_v49 = vadd.f32 %v3699_v50, %v1620_v43  ;;  %v3813_v26 = vadd.f32 %v3680_v62, %v1621_v35  ;;  %v3816_v10 = vadd.f32 %v3699_v50, %v1622_v63  ;;  %v3819_v28 = vadd.f32 %v3680_v62, %v1623_v29  ;;  %v4218_v35 = vld [vmem:[#allocation42_spill] sm:$0xff] }
 0x346   :  { %v3822_v11 = vadd.f32 %v3699_v50, %v1624_v30  ;;  %v3825_v4 = vadd.f32 %v3680_v62, %v1625_v25  ;;  %v3828_v51 = vadd.f32 %v3699_v50, %v1626_v40  ;;  %v3831_v5 = vadd.f32 %v3680_v62, %v1627_v57  ;;  %v4219_v29 = vld [vmem:[#allocation18_spill] sm:$0xff]  ;;  %v4220_v57 = vld [vmem:[#allocation19_spill] sm:$0xff] }
 0x347   :  { %v3834_v52 = vadd.f32 %v3699_v50, %v1628_v20  ;;  %v3837_v27 = vadd.f32 %v3680_v62, %v1629_v12  ;;  %v3840_v37 = vadd.f32 %v3699_v50, %v1630_v16  ;;  %v3843_v48 = vadd.f32 %v3680_v62, %v1631_v61  ;;  %v4221_v12 = vld [vmem:[#allocation20_spill] sm:$0xff] }
 0x348   :  { %v3846_v1 = vadd.f32 %v3699_v50, %v1632_v21  ;;  %v3849_v55 = vadd.f32 %v3680_v62, %v1633_v19  ;;  %v3852_v42 = vadd.f32 %v3699_v50, %v1634_v6  ;;  %v3855_v13 = vadd.f32 %v3680_v62, %v1635_v0  ;;  %v4222_v19 = vld [vmem:[#allocation23_spill] sm:$0xff] }
 0x349   :  { %v3858_v39 = vadd.f32 %v3699_v50, %v1636_v45  ;;  %v1721_v58 = vmax.f32 %v1657_v2, 0.0  ;;  %v1723_v46 = vmax.f32 %v1659_v36, 0.0  ;;  %v1722_v44 = vmax.f32 %v1658_v17, 0.0 }
 0x34a   :  { %v1724_v43 = vmax.f32 %v1660_v34, 0.0  ;;  %v1582_v63 = vmul.f32 %v3685_v59, %v4218_v35  ;;  %v1583_v30 = vmul.f32 %v3675_v41, %v4219_v29  ;;  %v1726_v25 = vmax.f32 %v1662_v53, 0.0  ;;  %v4226_v29 = vld [vmem:[#allocation27_spill] sm:$0xff] }
 0x34b   :  { %v1728_v40 = vmax.f32 %v1664_v8, 0.0  ;;  %v1584_v20 = vmul.f32 %v3685_v59, %v4220_v57  ;;  %v1585_v16 = vmul.f32 %v3675_v41, %v4221_v12  ;;  %v1785_v61 = vpack.c.bf16 %v1723_v46, %v1721_v58 }
 0x34c   :  { %v1786_v21 = vpack.c.bf16 %v1724_v43, %v1722_v44  ;;  %v1587_v6 = vmul.f32 %v3675_v41, %v4222_v19  ;;  %v1589_v0 = vmul.f32 %v3675_v41, %v4223_v22  ;;  %v1661_v9 = vadd.f32 %v3699_v50, %v3697_v60  ;;  %v4224_v60 = vld [vmem:[#allocation21_spill] sm:$0xff] }
 0x34d   :  { %v1663_v45 = vadd.f32 %v3699_v50, %v3705_v47  ;;  %v1666_v2 = vadd.f32 %v3680_v62, %v1583_v30  ;;  %v1668_v17 = vadd.f32 %v3680_v62, %v1585_v16  ;;  %v1788_v36 = vpack.c.bf16 %v1728_v40, %v1726_v25  ;;  %v4225_v47 = vld [vmem:[#allocation25_spill] sm:$0xff] }
 0x34e   :  { %1984 = vmatprep.mubr.bf16.mxu0 %v1786_v21  ;;  %v1665_v34 = vadd.f32 %v3699_v50, %v1582_v63  ;;  %v1667_v53 = vadd.f32 %v3699_v50, %v1584_v20  ;;  %v1670_v8 = vadd.f32 %v3680_v62, %v1587_v6  ;;  %v1672_v58 = vadd.f32 %v3680_v62, %v1589_v0  ;;  %v4227_v63 = vld [vmem:[#allocation26_spill] sm:$0xff] }
 0x34f   :  { %1985 = vmatmul.mubr.bf16.vlgmr.msra.gmra.mxu0 %v1785_v61  ;;  %v1586_v46 = vmul.f32 %v3685_v59, %v4224_v60  ;;  %v1588_v44 = vmul.f32 %v3685_v59, %v4225_v47  ;;  %v1725_v43 = vmax.f32 %v1661_v9, 0.0  ;;  %v1727_v35 = vmax.f32 %v1663_v45, 0.0 }
 0x350   :  { %1992 = vmatprep.mubr.bf16.mxu0 %v1788_v36  ;;  %v1591_v30 = vmul.f32 %v3675_v41, %v4226_v29  ;;  %v1593_v25 = vmul.f32 %v3675_v41, %v4227_v63  ;;  %v1730_v40 = vmax.f32 %v1666_v2, 0.0  ;;  %v1732_v57 = vmax.f32 %v1668_v17, 0.0 }
 0x351   :  { %v1729_v20 = vmax.f32 %v1665_v34, 0.0  ;;  %v1731_v12 = vmax.f32 %v1667_v53, 0.0  ;;  %v1734_v16 = vmax.f32 %v1670_v8, 0.0  ;;  %v1736_v61 = vmax.f32 %v1672_v58, 0.0 }
 0x352   :  { %v1784_v21 = vmax.f32 %v3683_v33, 0.0  ;;  %v3892_v19 = vadd.f32 %v3699_v50, %v1586_v46  ;;  %v3895_v6 = vadd.f32 %v3699_v50, %v1588_v44  ;;  %v3898_v22 = vadd.f32 %v3680_v62, %v1591_v30 }
 0x353   :  { %v3901_v0 = vadd.f32 %v3680_v62, %v1593_v25  ;;  %v1787_v9 = vpack.c.bf16 %v1727_v35, %v1725_v43  ;;  %v1790_v45 = vpack.c.bf16 %v1732_v57, %v1730_v40  ;;  %v1753_v2 = vmax.f32 %v3773_v18, 0.0 }
 0x354   :  { %v1755_v17 = vmax.f32 %v3776_v14, 0.0  ;;  %v1758_v33 = vmax.f32 %v3783_v54, 0.0  ;;  %v1789_v36 = vpack.c.bf16 %v1731_v12, %v1729_v20  ;;  %v1792_v34 = vpack.c.bf16 %v1736_v61, %v1734_v16  ;;  %v4228_v61 = vld [vmem:[#allocation24_spill] sm:$0xff] }
 0x355   :  { %v1760_v53 = vmax.f32 %v3789_v3, 0.0  ;;  %v1757_v8 = vmax.f32 %v3780_v24, 0.0  ;;  %v1759_v60 = vmax.f32 %v3786_v7, 0.0  ;;  %v1762_v46 = vmax.f32 %v3795_v31, 0.0 }
 0x356   :  { %v3908_v58 = vpack.c.bf16 %v1755_v17, %v1753_v2  ;;  %v1764_v18 = vmax.f32 %v3801_v56, 0.0  ;;  %v1761_v14 = vmax.f32 %v3792_v23, 0.0  ;;  %v1763_v54 = vmax.f32 %v3798_v38, 0.0 }
 0x357   :  { %1993 = vmatmul.mubr.bf16.gmra.mxu0 %v1787_v9  ;;  %v3913_v47 = vpack.c.bf16 %v1760_v53, %v1758_v33  ;;  %v1766_v44 = vmax.f32 %v3807_v15, 0.0  ;;  %v3918_v3 = vpack.c.bf16 %v1759_v60, %v1757_v8  ;;  %v1768_v43 = vmax.f32 %v3813_v26, 0.0 }
 0x358   :  { %2000 = vmatprep.mubr.bf16.mxu0 %v1790_v45  ;;  %v3920_v24 = vpack.c.bf16 %v1764_v18, %v1762_v46  ;;  %v1765_v7 = vmax.f32 %v3804_v32, 0.0  ;;  %v3924_v35 = vpack.c.bf16 %v1763_v54, %v1761_v14  ;;  %v1767_v31 = vmax.f32 %v3810_v49, 0.0  ;;  %v4230_v45 = vld [vmem:[#allocation31_spill] sm:$0xff]  ;;  %v4232_v46 = vld [vmem:[#allocation28_spill] sm:$0xff]  ;;  %v4233_v14 = vld [vmem:[#allocation33_spill] sm:$0xff] }
 0x359   :  { %v1770_v56 = vmax.f32 %v3819_v28, 0.0  ;;  %v1772_v23 = vmax.f32 %v3825_v4, 0.0  ;;  %v3929_v29 = vpack.c.bf16 %v1768_v43, %v1766_v44  ;;  %v1769_v38 = vmax.f32 %v3816_v10, 0.0  ;;  %v4234_v44 = vld [vmem:[#allocation35_spill] sm:$0xff] }
 0x35a   :  { %v1771_v15 = vmax.f32 %v3822_v11, 0.0  ;;  %v1774_v30 = vmax.f32 %v3831_v5, 0.0  ;;  %v3934_v63 = vpack.c.bf16 %v1767_v31, %v1765_v7  ;;  %v1776_v32 = vmax.f32 %v3837_v27, 0.0  ;;  %v4235_v7 = vld [vmem:[#allocation34_spill] sm:$0xff] }
 0x35b   :  { %v3936_v26 = vpack.c.bf16 %v1772_v23, %v1770_v56  ;;  %v1773_v49 = vmax.f32 %v3828_v51, 0.0  ;;  %v1775_v28 = vmax.f32 %v3834_v52, 0.0  ;;  %v1778_v4 = vmax.f32 %v3843_v48, 0.0 }
 0x35c   :  { %v3940_v25 = vpack.c.bf16 %v1771_v15, %v1769_v38  ;;  %v1780_v10 = vmax.f32 %v3849_v55, 0.0  ;;  %v3945_v11 = vpack.c.bf16 %v1776_v32, %v1774_v30  ;;  %v1777_v5 = vmax.f32 %v3840_v37, 0.0 }
 0x35d   :  { %v1779_v40 = vmax.f32 %v3846_v1, 0.0  ;;  %v1782_v57 = vmax.f32 %v3855_v13, 0.0  ;;  %v3950_v27 = vpack.c.bf16 %v1775_v28, %v1773_v49  ;;  %v1781_v52 = vmax.f32 %v3852_v42, 0.0  ;;  %v4229_v42 = vld [vmem:[#allocation29_spill] sm:$0xff] }
 0x35e   :  { %v3952_v51 = vpack.c.bf16 %v1780_v10, %v1778_v4  ;;  %v1783_v48 = vmax.f32 %v3858_v39, 0.0  ;;  %v1733_v55 = vmax.f32 %v3892_v19, 0.0  ;;  %v1735_v20 = vmax.f32 %v3895_v6, 0.0  ;;  %v4231_v6 = vld [vmem:[#allocation30_spill] sm:$0xff] }
 0x35f   :  { %2001 = vmatmul.mubr.bf16.gmra.mxu0 %v1789_v36  ;;  %v3958_v12 = vpack.c.bf16 %v1779_v40, %v1777_v5  ;;  %v3960_v37 = vpack.c.bf16 %v1784_v21, %v1782_v57  ;;  %v1738_v1 = vmax.f32 %v3898_v22, 0.0  ;;  %v1740_v13 = vmax.f32 %v3901_v0, 0.0  ;;  %v4236_v5 = vld [vmem:[#allocation32_spill] sm:$0xff]  ;;  %v4237_v57 = vld [vmem:[#allocation37_spill] sm:$0xff] }
 0x360   :  { %2008 = vmatprep.mubr.bf16.mxu0 %v1792_v34  ;;  %v3964_v16 = vpack.c.bf16 %v1783_v48, %v1781_v52  ;;  %v1590_v9 = vmul.f32 %v3685_v59, %v4228_v61  ;;  %v1592_v39 = vmul.f32 %v3685_v59, %v4229_v42  ;;  %v1595_v19 = vmul.f32 %v3675_v41, %v4230_v45  ;;  %v4238_v48 = vld [vmem:[#allocation39_spill] sm:$0xff] }
 0x361   :  { %v1597_v2 = vmul.f32 %v3675_v41, %v4231_v6  ;;  %v1791_v17 = vpack.c.bf16 %v1735_v20, %v1733_v55  ;;  %v1794_v36 = vpack.c.bf16 %v1740_v13, %v1738_v1  ;;  %v1594_v18 = vmul.f32 %v3685_v59, %v4232_v46  ;;  %v4239_v20 = vld [vmem:[#allocation38_spill] sm:$0xff] }
 0x362   :  { %v1673_v21 = vadd.f32 %v3699_v50, %v1590_v9  ;;  %v1675_v22 = vadd.f32 %v3699_v50, %v1592_v39  ;;  %v1678_v0 = vadd.f32 %v3680_v62, %v1595_v19  ;;  %v1596_v54 = vmul.f32 %v3685_v59, %v4233_v14 }
 0x363   :  { %v1680_v33 = vadd.f32 %v3680_v62, %v1597_v2  ;;  %v1599_v43 = vmul.f32 %v3675_v41, %v4234_v44  ;;  %v1601_v31 = vmul.f32 %v3675_v41, %v4235_v7  ;;  %v1677_v56 = vadd.f32 %v3699_v50, %v1594_v18 }
 0x364   :  { %v1737_v34 = vmax.f32 %v1673_v21, 0.0  ;;  %v1739_v53 = vmax.f32 %v1675_v22, 0.0  ;;  %v1742_v8 = vmax.f32 %v1678_v0, 0.0  ;;  %v1679_v23 = vadd.f32 %v3699_v50, %v1596_v54  ;;  %v4240_v22 = vld [vmem:[#allocation36_spill] sm:$0xff]  ;;  %v4241_v0 = vld [vmem:[#allocation41_spill] sm:$0xff] }
 0x365   :  { %v1744_v60 = vmax.f32 %v1680_v33, 0.0  ;;  %v1682_v15 = vadd.f32 %v3680_v62, %v1599_v43  ;;  %v1684_v30 = vadd.f32 %v3680_v62, %v1601_v31  ;;  %v1741_v49 = vmax.f32 %v1677_v56, 0.0 }
 0x366   :  { %v1793_v38 = vpack.c.bf16 %v1739_v53, %v1737_v34  ;;  %v1743_v28 = vmax.f32 %v1679_v23, 0.0  ;;  %v1598_v40 = vmul.f32 %v3685_v59, %v4236_v5  ;;  %v1600_v52 = vmul.f32 %v3685_v59, %v4237_v57  ;;  %v4243_v53 = vld [vmem:[#allocation16_spill] sm:$0xff] }
 0x367   :  { %2009 = vmatmul.mubr.bf16.gmra.mxu0 %v1791_v17  ;;  %v1796_v32 = vpack.c.bf16 %v1744_v60, %v1742_v8  ;;  %v1746_v4 = vmax.f32 %v1682_v15, 0.0  ;;  %v1748_v10 = vmax.f32 %v1684_v30, 0.0  ;;  %v1603_v55 = vmul.f32 %v3675_v41, %v4238_v48 }
 0x368   :  { %2016 = vmatprep.mubr.bf16.mxu0 %v1794_v36  ;;  %v1605_v1 = vmul.f32 %v3675_v41, %v4239_v20  ;;  %v1681_v13 = vadd.f32 %v3699_v50, %v1598_v40  ;;  %v1683_v61 = vadd.f32 %v3699_v50, %v1600_v52  ;;  %v1795_v9 = vpack.c.bf16 %v1743_v28, %v1741_v49  ;;  %v4242_v36 = vld [vmem:[#allocation40_spill] sm:$0xff] }
 0x369   :  { %v1686_v42 = vadd.f32 %v3680_v62, %v1603_v55  ;;  %v1798_v45 = vpack.c.bf16 %v1748_v10, %v1746_v4  ;;  %v1602_v17 = vmul.f32 %v3685_v59, %v4240_v22  ;;  %v1604_v33 = vmul.f32 %v3685_v59, %v4241_v0 }
 0x36a   :  { %v1688_v39 = vadd.f32 %v3680_v62, %v1605_v1  ;;  %v1745_v19 = vmax.f32 %v1681_v13, 0.0  ;;  %v1747_v6 = vmax.f32 %v1683_v61, 0.0  ;;  %v1607_v34 = vmul.f32 %v3675_v41, %v4242_v36 }
 0x36b   :  { %v1750_v2 = vmax.f32 %v1686_v42, 0.0  ;;  %v1609_v8 = vmul.f32 %v3675_v41, %v4243_v53  ;;  %v1685_v60 = vadd.f32 %v3699_v50, %v1602_v17  ;;  %v1687_v46 = vadd.f32 %v3699_v50, %v1604_v33 }
 0x36c   :  { %v1752_v21 = vmax.f32 %v1688_v39, 0.0  ;;  %v1797_v18 = vpack.c.bf16 %v1747_v6, %v1745_v19  ;;  %v1690_v14 = vadd.f32 %v3680_v62, %v1607_v34 }
 0x36d   :  { %v1692_v54 = vadd.f32 %v3680_v62, %v1609_v8  ;;  %v1749_v43 = vmax.f32 %v1685_v60, 0.0  ;;  %v1751_v59 = vmax.f32 %v1687_v46, 0.0  ;;  %v4032_v62 = vld [vmem:[%s4077_s5] ss:$0 sm:$0xff]  ;;  %s2603_s5 = smov [#allocation11]  }
 0x36e   :  { %v1800_v44 = vpack.c.bf16 %v1752_v21, %v1750_v2  ;;  %v1754_v7 = vmax.f32 %v1690_v14, 0.0  ;;  %s2150_s23 = sshll.u32 %s2603_s5, 4  ;;  %s2151_s23 = int_to_ptr.vmem [resolvable:$true] %s2150_s23 }
 0x36f   :  { %2017 = vmatmul.mubr.bf16.gmra.mxu0 %v1793_v38  ;;  %v1756_v31 = vmax.f32 %v1692_v54, 0.0  ;;  %v1799_v56 = vpack.c.bf16 %v1751_v59, %v1749_v43  ;;  %s2565_s24 = scalar_lea.vmem %s2151_s23, 4096  ;;  %p2570_p12 = scmp.lt.s32.totalorder %s2151_s23, %s2151_s23 }
 0x370   :  { %2024 = vmatprep.mubr.bf16.mxu0 %v1796_v32  ;;  %p2566_p11 = scmp.ne.s32.totalorder %s2151_s23, %s2565_s24  ;;  %p2571_p13 = scmp.lt.s32.totalorder %s2565_s24, %s2565_s24 }
 0x371   :  { %v1802_v23 = vpack.c.bf16 %v1756_v31, %v1754_v7 }
 0x372   :  { %p2572_p0 = por %p2571_p13, %p2570_p12 }
 0x374   :  { %p2573_p1 = pnand %p2572_p0, %p2566_p11 }
 0x377   :  { %2025 = vmatmul.mubr.bf16.gmra.mxu0 %v1795_v9 }
 0x378   :  { %2032 = vmatprep.mubr.bf16.mxu0 %v1798_v45 }
 0x37f   :  { %2033 = vmatmul.mubr.bf16.gmra.mxu0 %v1797_v18 }
 0x380   :  { %2040 = vmatprep.mubr.bf16.mxu0 %v1800_v44 }
 0x387   :  { %2041 = vmatmul.mubr.bf16.gmra.mxu0 %v1799_v56 }
 0x388   :  { %2048 = vmatprep.mubr.bf16.mxu0 %v1802_v23 }
 0x38f   :  { %2049 = vmatmul.mubr.bf16.gmra.mxu0 %v3908_v58 }
 0x390   :  { %2056 = vmatprep.mubr.bf16.mxu0 %v3913_v47 }
 0x397   :  { %2057 = vmatmul.mubr.bf16.gmra.mxu0 %v3918_v3 }
 0x398   :  { %2064 = vmatprep.mubr.bf16.mxu0 %v3920_v24 }
 0x39f   :  { %2065 = vmatmul.mubr.bf16.gmra.mxu0 %v3924_v35 }
 0x3a0   :  { %2072 = vmatprep.mubr.bf16.mxu0 %v3929_v29 }
 0x3a7   :  { %2073 = vmatmul.mubr.bf16.gmra.mxu0 %v3934_v63 }
 0x3a8   :  { %2080 = vmatprep.mubr.bf16.mxu0 %v3936_v26 }
 0x3af   :  { %2081 = vmatmul.mubr.bf16.gmra.mxu0 %v3940_v25 }
 0x3b0   :  { %2088 = vmatprep.mubr.bf16.mxu0 %v3945_v11 }
 0x3b7   :  { %2089 = vmatmul.mubr.bf16.gmra.mxu0 %v3950_v27 }
 0x3b8   :  { %2096 = vmatprep.mubr.bf16.mxu0 %v3952_v51 }
 0x3bf   :  { %2097 = vmatmul.mubr.bf16.gmra.mxu0 %v3958_v12 }
 0x3c0   :  { %2104 = vmatprep.mubr.bf16.mxu0 %v3960_v37 }
 0x3c7   :  { %2105 = vmatmul.mubr.bf16.gmra.mxu0 %v3964_v16 }
 0x40f   :  { %v2245_v41 = vpop.f32.mrf.mxu0 }
 0x411   :  { %v2246_v50 = vpop.f32.mrf.mxu0 }
 0x412   :  { %v2247_v58 = vadd.f32 %v2246_v50, %v2245_v41 }
 0x413   :  { %v2248_v47 = vpop.f32.mrf.mxu0 }
 0x414   :  { %v1987_v3 = vadd.f32 %v2247_v58, %v4032_v62 }
 0x415   :  { %v2249_v24 = vpop.f32.mrf.mxu0 }
 0x416   :  { %2113 = vst [vmem:[#allocation11] sm:$0xff] %v1987_v3  ;;  %v2250_v35 = vadd.f32 %v2249_v24, %v2248_v47 }
 0x417   :  { %v2251_v29 = vpop.f32.mrf.mxu0 }
 0x418   :  { %v1990_v63 = vadd.f32 %v2250_v35, %v4032_v62 }
 0x419   :  { %v2252_v26 = vpop.f32.mrf.mxu0 }
 0x41a   :  { %2114 = vst [vmem:[#allocation11 + $0x8] sm:$0xff] %v1990_v63  ;;  %v2253_v25 = vadd.f32 %v2252_v26, %v2251_v29 }
 0x41b   :  { %v2254_v11 = vpop.f32.mrf.mxu0 }
 0x41c   :  { %v1995_v27 = vadd.f32 %v2253_v25, %v4032_v62 }
 0x41d   :  { %v2255_v51 = vpop.f32.mrf.mxu0 }
 0x41e   :  { %2115 = vst [vmem:[#allocation11 + $0x10] sm:$0xff] %v1995_v27  ;;  %v2256_v12 = vadd.f32 %v2255_v51, %v2254_v11 }
 0x41f   :  { %v2257_v37 = vpop.f32.mrf.mxu0 }
 0x420   :  { %v1998_v16 = vadd.f32 %v2256_v12, %v4032_v62 }
 0x421   :  { %v2258_v38 = vpop.f32.mrf.mxu0 }
 0x422   :  { %2116 = vst [vmem:[#allocation11 + $0x18] sm:$0xff] %v1998_v16  ;;  %v2259_v15 = vadd.f32 %v2258_v38, %v2257_v37 }
 0x423   :  { %v2260_v30 = vpop.f32.mrf.mxu0 }
 0x424   :  { %v2003_v32 = vadd.f32 %v2259_v15, %v4032_v62 }
 0x425   :  { %v2261_v49 = vpop.f32.mrf.mxu0 }
 0x426   :  { %2117 = vst [vmem:[#allocation11 + $0x20] sm:$0xff] %v2003_v32  ;;  %v2262_v28 = vadd.f32 %v2261_v49, %v2260_v30 }
 0x427   :  { %v2263_v4 = vpop.f32.mrf.mxu0 }
 0x428   :  { %v2006_v10 = vadd.f32 %v2262_v28, %v4032_v62 }
 0x429   :  { %v2264_v5 = vpop.f32.mrf.mxu0 }
 0x42a   :  { %2118 = vst [vmem:[#allocation11 + $0x28] sm:$0xff] %v2006_v10  ;;  %v2265_v40 = vadd.f32 %v2264_v5, %v2263_v4 }
 0x42b   :  { %v2266_v57 = vpop.f32.mrf.mxu0 }
 0x42c   :  { %v2011_v52 = vadd.f32 %v2265_v40, %v4032_v62 }
 0x42d   :  { %v2267_v48 = vpop.f32.mrf.mxu0 }
 0x42e   :  { %2119 = vst [vmem:[#allocation11 + $0x30] sm:$0xff] %v2011_v52  ;;  %v2268_v55 = vadd.f32 %v2267_v48, %v2266_v57 }
 0x42f   :  { %v2269_v20 = vpop.f32.mrf.mxu0 }
 0x430   :  { %v2014_v1 = vadd.f32 %v2268_v55, %v4032_v62 }
 0x431   :  { %v2270_v13 = vpop.f32.mrf.mxu0 }
 0x432   :  { %2120 = vst [vmem:[#allocation11 + $0x38] sm:$0xff] %v2014_v1  ;;  %v2271_v61 = vadd.f32 %v2270_v13, %v2269_v20 }
 0x433   :  { %v2272_v9 = vpop.f32.mrf.mxu0 }
 0x434   :  { %v2019_v42 = vadd.f32 %v2271_v61, %v4032_v62 }
 0x435   :  { %v2273_v39 = vpop.f32.mrf.mxu0 }
 0x436   :  { %2121 = vst [vmem:[#allocation11 + $0x40] sm:$0xff] %v2019_v42  ;;  %v2274_v45 = vadd.f32 %v2273_v39, %v2272_v9 }
 0x437   :  { %v2275_v19 = vpop.f32.mrf.mxu0 }
 0x438   :  { %v2022_v6 = vadd.f32 %v2274_v45, %v4032_v62 }
 0x439   :  { %v2276_v2 = vpop.f32.mrf.mxu0 }
 0x43a   :  { %2122 = vst [vmem:[#allocation11 + $0x48] sm:$0xff] %v2022_v6  ;;  %v2277_v21 = vadd.f32 %v2276_v2, %v2275_v19 }
 0x43b   :  { %v2278_v22 = vpop.f32.mrf.mxu0 }
 0x43c   :  { %v2027_v17 = vadd.f32 %v2277_v21, %v4032_v62 }
 0x43d   :  { %v2279_v0 = vpop.f32.mrf.mxu0 }
 0x43e   :  { %2123 = vst [vmem:[#allocation11 + $0x50] sm:$0xff] %v2027_v17  ;;  %v2280_v33 = vadd.f32 %v2279_v0, %v2278_v22 }
 0x43f   :  { %v2281_v36 = vpop.f32.mrf.mxu0 }
 0x440   :  { %v2030_v34 = vadd.f32 %v2280_v33, %v4032_v62 }
 0x441   :  { %v2282_v53 = vpop.f32.mrf.mxu0 }
 0x442   :  { %2124 = vst [vmem:[#allocation11 + $0x58] sm:$0xff] %v2030_v34  ;;  %v2283_v8 = vadd.f32 %v2282_v53, %v2281_v36 }
 0x443   :  { %v2284_v60 = vpop.f32.mrf.mxu0 }
 0x444   :  { %v2035_v46 = vadd.f32 %v2283_v8, %v4032_v62 }
 0x445   :  { %v2285_v18 = vpop.f32.mrf.mxu0 }
 0x446   :  { %2125 = vst [vmem:[#allocation11 + $0x60] sm:$0xff] %v2035_v46  ;;  %v2286_v14 = vadd.f32 %v2285_v18, %v2284_v60 }
 0x447   :  { %v2287_v54 = vpop.f32.mrf.mxu0 }
 0x448   :  { %v2038_v44 = vadd.f32 %v2286_v14, %v4032_v62 }
 0x449   :  { %v2288_v43 = vpop.f32.mrf.mxu0 }
 0x44a   :  { %2126 = vst [vmem:[#allocation11 + $0x68] sm:$0xff] %v2038_v44  ;;  %v2289_v59 = vadd.f32 %v2288_v43, %v2287_v54 }
 0x44b   :  { %v2290_v7 = vpop.f32.mrf.mxu0 }
 0x44c   :  { %v2043_v31 = vadd.f32 %v2289_v59, %v4032_v62 }
 0x44d   :  { %v2291_v56 = vpop.f32.mrf.mxu0 }
 0x44e   :  { %2127 = vst [vmem:[#allocation11 + $0x70] sm:$0xff] %v2043_v31  ;;  %v2292_v23 = vadd.f32 %v2291_v56, %v2290_v7 }
 0x44f   :  { %v2293_v41 = vpop.f32.mrf.mxu0 }
 0x450   :  { %v2046_v50 = vadd.f32 %v2292_v23, %v4032_v62 }
 0x451   :  { %v2294_v58 = vpop.f32.mrf.mxu0 }
 0x452   :  { %2128 = vst [vmem:[#allocation11 + $0x78] sm:$0xff] %v2046_v50  ;;  %v2295_v47 = vadd.f32 %v2294_v58, %v2293_v41 }
 0x453   :  { %v2296_v3 = vpop.f32.mrf.mxu0 }
 0x454   :  { %v2051_v24 = vadd.f32 %v2295_v47, %v4032_v62 }
 0x455   :  { %v2297_v35 = vpop.f32.mrf.mxu0 }
 0x456   :  { %2129 = vst [vmem:[#allocation11 + $0x80] sm:$0xff] %v2051_v24  ;;  %v2298_v29 = vadd.f32 %v2297_v35, %v2296_v3 }
 0x457   :  { %v2299_v63 = vpop.f32.mrf.mxu0 }
 0x458   :  { %v2054_v26 = vadd.f32 %v2298_v29, %v4032_v62 }
 0x459   :  { %v2300_v25 = vpop.f32.mrf.mxu0 }
 0x45a   :  { %2130 = vst [vmem:[#allocation11 + $0x88] sm:$0xff] %v2054_v26  ;;  %v2301_v11 = vadd.f32 %v2300_v25, %v2299_v63 }
 0x45b   :  { %v2302_v27 = vpop.f32.mrf.mxu0 }
 0x45c   :  { %v2059_v51 = vadd.f32 %v2301_v11, %v4032_v62 }
 0x45d   :  { %v2303_v12 = vpop.f32.mrf.mxu0 }
 0x45e   :  { %2131 = vst [vmem:[#allocation11 + $0x90] sm:$0xff] %v2059_v51  ;;  %v2304_v37 = vadd.f32 %v2303_v12, %v2302_v27 }
 0x45f   :  { %v2305_v16 = vpop.f32.mrf.mxu0 }
 0x460   :  { %v2062_v38 = vadd.f32 %v2304_v37, %v4032_v62 }
 0x461   :  { %v2306_v15 = vpop.f32.mrf.mxu0 }
 0x462   :  { %2132 = vst [vmem:[#allocation11 + $0x98] sm:$0xff] %v2062_v38  ;;  %v2307_v30 = vadd.f32 %v2306_v15, %v2305_v16 }
 0x463   :  { %v2308_v32 = vpop.f32.mrf.mxu0 }
 0x464   :  { %v2067_v49 = vadd.f32 %v2307_v30, %v4032_v62 }
 0x465   :  { %v2309_v28 = vpop.f32.mrf.mxu0 }
 0x466   :  { %2133 = vst [vmem:[#allocation11 + $0xa0] sm:$0xff] %v2067_v49  ;;  %v2310_v4 = vadd.f32 %v2309_v28, %v2308_v32 }
 0x467   :  { %v2311_v10 = vpop.f32.mrf.mxu0 }
 0x468   :  { %v2070_v5 = vadd.f32 %v2310_v4, %v4032_v62 }
 0x469   :  { %v2312_v40 = vpop.f32.mrf.mxu0 }
 0x46a   :  { %2134 = vst [vmem:[#allocation11 + $0xa8] sm:$0xff] %v2070_v5  ;;  %v2313_v57 = vadd.f32 %v2312_v40, %v2311_v10 }
 0x46b   :  { %v2314_v52 = vpop.f32.mrf.mxu0 }
 0x46c   :  { %v2075_v48 = vadd.f32 %v2313_v57, %v4032_v62 }
 0x46d   :  { %v2315_v55 = vpop.f32.mrf.mxu0 }
 0x46e   :  { %2135 = vst [vmem:[#allocation11 + $0xb0] sm:$0xff] %v2075_v48  ;;  %v2316_v20 = vadd.f32 %v2315_v55, %v2314_v52 }
 0x46f   :  { %v2317_v1 = vpop.f32.mrf.mxu0 }
 0x470   :  { %v2078_v13 = vadd.f32 %v2316_v20, %v4032_v62 }
 0x471   :  { %v2318_v61 = vpop.f32.mrf.mxu0 }
 0x472   :  { %2136 = vst [vmem:[#allocation11 + $0xb8] sm:$0xff] %v2078_v13  ;;  %v2319_v9 = vadd.f32 %v2318_v61, %v2317_v1 }
 0x473   :  { %v2320_v42 = vpop.f32.mrf.mxu0 }
 0x474   :  { %v2083_v39 = vadd.f32 %v2319_v9, %v4032_v62 }
 0x475   :  { %v2321_v45 = vpop.f32.mrf.mxu0 }
 0x476   :  { %2137 = vst [vmem:[#allocation11 + $0xc0] sm:$0xff] %v2083_v39  ;;  %v2322_v19 = vadd.f32 %v2321_v45, %v2320_v42 }
 0x477   :  { %v2323_v6 = vpop.f32.mrf.mxu0 }
 0x478   :  { %v2086_v2 = vadd.f32 %v2322_v19, %v4032_v62 }
 0x479   :  { %v2324_v21 = vpop.f32.mrf.mxu0 }
 0x47a   :  { %2138 = vst [vmem:[#allocation11 + $0xc8] sm:$0xff] %v2086_v2  ;;  %v2325_v22 = vadd.f32 %v2324_v21, %v2323_v6 }
 0x47b   :  { %v2326_v17 = vpop.f32.mrf.mxu0 }
 0x47c   :  { %v2091_v0 = vadd.f32 %v2325_v22, %v4032_v62 }
 0x47d   :  { %v2327_v33 = vpop.f32.mrf.mxu0 }
 0x47e   :  { %2139 = vst [vmem:[#allocation11 + $0xd0] sm:$0xff] %v2091_v0  ;;  %v2328_v36 = vadd.f32 %v2327_v33, %v2326_v17 }
 0x47f   :  { %v2329_v34 = vpop.f32.mrf.mxu0 }
 0x480   :  { %v2094_v53 = vadd.f32 %v2328_v36, %v4032_v62 }
 0x481   :  { %v2330_v8 = vpop.f32.mrf.mxu0 }
 0x482   :  { %2140 = vst [vmem:[#allocation11 + $0xd8] sm:$0xff] %v2094_v53  ;;  %v2331_v60 = vadd.f32 %v2330_v8, %v2329_v34 }
 0x483   :  { %v2332_v46 = vpop.f32.mrf.mxu0 }
 0x484   :  { %v2099_v18 = vadd.f32 %v2331_v60, %v4032_v62 }
 0x485   :  { %v2333_v14 = vpop.f32.mrf.mxu0 }
 0x486   :  { %2141 = vst [vmem:[#allocation11 + $0xe0] sm:$0xff] %v2099_v18  ;;  %v2334_v54 = vadd.f32 %v2333_v14, %v2332_v46 }
 0x487   :  { %v2335_v44 = vpop.f32.mrf.mxu0 }
 0x488   :  { %v2102_v43 = vadd.f32 %v2334_v54, %v4032_v62 }
 0x489   :  { %v2336_v59 = vpop.f32.mrf.mxu0 }
 0x48a   :  { %2142 = vst [vmem:[#allocation11 + $0xe8] sm:$0xff] %v2102_v43  ;;  %v2337_v7 = vadd.f32 %v2336_v59, %v2335_v44 }
 0x48b   :  { %v2338_v31 = vpop.f32.mrf.mxu0 }
 0x48c   :  { %v2107_v56 = vadd.f32 %v2337_v7, %v4032_v62 }
 0x48d   :  { %v2339_v23 = vpop.f32.mrf.mxu0 }
 0x48e   :  { %2143 = vst [vmem:[#allocation11 + $0xf0] sm:$0xff] %v2107_v56  ;;  %v2340_v41 = vadd.f32 %v2339_v23, %v2338_v31 }
 0x490   :  { %v2110_v50 = vadd.f32 %v2340_v41, %v4032_v62 }
 0x492   :  { %2144 = vst [vmem:[#allocation11 + $0xf8] sm:$0xff] %v2110_v50 }
 0x493   :  { %2576 = shalt.err (!%p2573_p1)
}
 0x494   :  { %2156 = dma.vmem_to_hbm [thread:$0]  %s2151_s23, 4096, %s4078_s6, [#allocation4], %s2595_s26, %s2595_s26, %s2596_s27  }
 0x495   :  { %2591 = dma.done.wait [#allocation4], 4096  }
 0x496   :  { %2592 = vsyncadd [#allocation4], 4294963200 }
 0x497   :  { %2160 = vsyncpa [#allocation3], 1 }
 0x498   :  { %2161 = vsyncpa [#allocation6], 1 }
 0x499   :  { %2162 = vsyncpa [#allocation9], 1 }
 0x49a   :  { %2163 = vsyncpa [#allocation4], 1 }

</bundles_post_ra>
